<compile_context>
chip_gen: v7x
topology: tpu7x:2x2x1
jax: 0.10.0
libtpu: 0.0.40
codegen_flags: <defaults>
</compile_context>

<pallas_src>
import functools

import jax
import jax.numpy as jnp
from jax import lax
from jax.experimental import pallas as pl
from jax.experimental.pallas import tpu as pltpu


# --------------------------------------------------------------------------- #
# Kernel: Bblk batch elements per grid step, all heads + output proj fused
# --------------------------------------------------------------------------- #
def _mha_fused_kernel(x_ref, wqkv_ref, wproj_ref, b_ref, o_ref, *,
                      num_heads, head_size, bblk):
    _, T, C = x_ref.shape
    M = bblk * T
    HD = num_heads * head_size

    # Single big QKV projection in bf16 on the MXU: (M, C) @ (C, 3*C) -> f32.
    # The softmax scale is already folded into the Q columns of wqkv.
    x = x_ref[...].reshape(M, C).astype(jnp.bfloat16)
    qkv = jnp.dot(x, wqkv_ref[...], preferred_element_type=jnp.float32)  # (M, 3C)

    # One bf16 cast per Q/K/V slab (lane-aligned slices at multiples of HD),
    # sliced per head below instead of casting inside the head loop.
    q_all = qkv[:, 0 * HD:1 * HD].astype(jnp.bfloat16)
    k_all = qkv[:, 1 * HD:2 * HD].astype(jnp.bfloat16)
    v_all = qkv[:, 2 * HD:3 * HD].astype(jnp.bfloat16)

    wproj = wproj_ref[...]                     # (C, C)  bf16
    bias = b_ref[...]                          # (1, C)  f32

    # Causal mask, computed once and reused by every (batch, head).
    row = lax.broadcasted_iota(jnp.int32, (T, T), 0)
    col = lax.broadcasted_iota(jnp.int32, (T, T), 1)
    causal = col <= row
    neg_big = jnp.float32(-1e30)   # large finite (safer than -inf)

    for b in range(bblk):                      # static Python loop, bblk small
        r0 = b * T
        acc = jnp.zeros((T, C), jnp.float32)   # fused concat+proj accumulator
        for h in range(num_heads):             # static Python loop, H small
            c0 = h * head_size
            q = q_all[r0:r0 + T, c0:c0 + head_size]     # (T, D) bf16, pre-scaled
            k = k_all[r0:r0 + T, c0:c0 + head_size]     # (T, D) bf16
            v = v_all[r0:r0 + T, c0:c0 + head_size]     # (T, D) bf16

            # q @ k^T without an explicit transpose: contract the D axes.
            s = lax.dot_general(
                q, k,
                dimension_numbers=(((1,), (1,)), ((), ())),
                preferred_element_type=jnp.float32)     # (T, T) f32
            s = jnp.where(causal, s, neg_big)

            # Softmax in f32 (VPU); reciprocal of the denominator on the EUP.
            m = jnp.max(s, axis=-1, keepdims=True)
            p = jnp.exp(s - m)
            p = p * pl.reciprocal(jnp.sum(p, axis=-1, keepdims=True), approx=True)

            # P @ V on the MXU in bf16, f32 accumulation.
            head_out = jnp.dot(p.astype(jnp.bfloat16), v,
                               preferred_element_type=jnp.float32)      # (T, D)

            # Fold torch.cat + proj:  acc += head_out @ w_proj[h*D:(h+1)*D, :]
            acc = acc + jnp.dot(head_out.astype(jnp.bfloat16),
                                wproj[c0:c0 + head_size, :],
                                preferred_element_type=jnp.float32)     # (T, C)

        o_ref[b] = (acc + bias).astype(o_ref.dtype)     # lane-dense (T, C) store


# --------------------------------------------------------------------------- #
# Parameter prep (do ONCE, not per forward call)
# --------------------------------------------------------------------------- #
def prepare_mha_params(wq, wk, wv, w_proj, b_proj):
    """Stack per-head weights into one (C, 3*C) matrix, fold the softmax scale
    into the Q columns, and pre-cast the matmul weights to bf16."""
    H, C, D = wq.shape
    assert H * D == C
    # NOTE: scale uses n_embed (C), not head_size -- matches bigram.py.
    scale = jnp.float32(float(C) ** -0.5)

    def _stack(w):                              # (H, C, D) -> (C, H*D)
        return jnp.transpose(w, (1, 0, 2)).reshape(C, H * D)

    w_qkv = jnp.concatenate(
        [_stack(wq) * scale, _stack(wk), _stack(wv)], axis=-1).astype(jnp.bfloat16)
    return (w_qkv,
            w_proj.astype(jnp.bfloat16),
            b_proj.reshape(1, C).astype(jnp.float32))


def _pick_block_batch(B, T, target_rows=256):
    """Block enough batch elems to present >=target_rows rows to the MXU,
    while keeping >=2 grid steps (v7x dual-TC / pipelining) when B allows."""
    bblk = max(1, min(B, max(1, target_rows // T)))
    while bblk > 1 and (B % bblk != 0 or B // bblk < 2):
        bblk -= 1
    return bblk


# --------------------------------------------------------------------------- #
# Wrapper
# --------------------------------------------------------------------------- #
def multi_head_attention(x, w_qkv, w_proj, b_proj, *, num_heads, head_size):
    """
    x:       (B, T, C)   float32
    w_qkv:   (C, 3*C)    bfloat16  (from prepare_mha_params; scale folded in)
    w_proj:  (C, C)      bfloat16  (stored as (in, out): y = x @ w_proj + b)
    b_proj:  (1, C)      float32
    returns: (B, T, C)   float32
    """
    B, T, C = x.shape
    assert num_heads * head_size == C
    assert w_qkv.shape == (C, 3 * C)

    bblk = _pick_block_batch(B, T)
    grid = (B // bblk,)

    kernel = functools.partial(
        _mha_fused_kernel, num_heads=num_heads, head_size=head_size, bblk=bblk)

    return pl.pallas_call(
        kernel,
        out_shape=jax.ShapeDtypeStruct((B, T, C), jnp.float32),
        grid_spec=pltpu.PrefetchScalarGridSpec(
            num_scalar_prefetch=0,
            grid=grid,                                       # Bblk batch / step
            in_specs=[
                pl.BlockSpec((bblk, T, C), lambda i: (i, 0, 0)),   # x
                pl.BlockSpec((C, 3 * C), lambda i: (0, 0)),        # stacked QKV
                pl.BlockSpec((C, C), lambda i: (0, 0)),            # w_proj
                pl.BlockSpec((1, C), lambda i: (0, 0)),            # b_proj
            ],
            out_specs=pl.BlockSpec((bblk, T, C), lambda i: (i, 0, 0)),
        ),
        compiler_params=pltpu.CompilerParams(
            dimension_semantics=("parallel",),
        ),
    )(x, w_qkv, w_proj, b_proj)


# --------------------------------------------------------------------------- #
# Pure-JAX reference (sanity check, f32 end to end)
# --------------------------------------------------------------------------- #
def reference(x, wq, wk, wv, w_proj, b_proj):
    B, T, C = x.shape
    H, _, D = wq.shape
    scale = float(C) ** -0.5
    mask = jnp.tril(jnp.ones((T, T), dtype=bool))
    heads = []
    for h in range(H):
        q = x @ wq[h]
        k = x @ wk[h]
        v = x @ wv[h]
        wei = (q @ jnp.swapaxes(k, -2, -1)) * scale
        wei = jnp.where(mask, wei, -jnp.inf)
        wei = jax.nn.softmax(wei, axis=-1)
        heads.append(wei @ v)
    cat = jnp.concatenate(heads, axis=-1)
    return cat @ w_proj + b_proj


# --------------------------------------------------------------------------- #
# Main
# --------------------------------------------------------------------------- #
if __name__ == "__main__":
    # Small shapes consistent with the module (n_embed scaled down from 384).
    B, T = 2, 64
    n_embed = 128
    num_heads = 4
    head_size = n_embed // num_heads          # 32

    key = jax.random.PRNGKey(0)
    kx, kq, kk, kv, kp, kb = jax.random.split(key, 6)

    x = jax.random.normal(kx, (B, T, n_embed), dtype=jnp.float32)

    wq = 0.02 * jax.random.normal(kq, (num_heads, n_embed, head_size), jnp.float32)
    wk = 0.02 * jax.random.normal(kk, (num_heads, n_embed, head_size), jnp.float32)
    wv = 0.02 * jax.random.normal(kv, (num_heads, n_embed, head_size), jnp.float32)
    w_proj = 0.02 * jax.random.normal(kp, (n_embed, n_embed), jnp.float32)
    b_proj = 0.02 * jax.random.normal(kb, (n_embed,), jnp.float32)

    # One-time parameter prep (stack + scale-fold + bf16 cast).
    w_qkv_p, w_proj_p, b_proj_p = prepare_mha_params(wq, wk, wv, w_proj, b_proj)

    fwd = jax.jit(functools.partial(
        multi_head_attention, num_heads=num_heads, head_size=head_size))
    out = jax.block_until_ready(fwd(x, w_qkv_p, w_proj_p, b_proj_p))

    ref = reference(x, wq, wk, wv, w_proj, b_proj)
    assert out.shape == (B, T, n_embed)
    assert jnp.allclose(out, ref, rtol=2e-2, atol=2e-2), "mismatch vs reference"

    print("KERNEL_OK")
</pallas_src>

<mosaic_0001>
module attributes {stable_mosaic.version = 11 : i64} {
  func.func @_mha_fused_kernel(%arg0: i32, %arg1: memref<1x64x128xf32, #tpu.memory_space<vmem>>, %arg2: memref<128x384xbf16, #tpu.memory_space<vmem>>, %arg3: memref<128x128xbf16, #tpu.memory_space<vmem>>, %arg4: memref<1x128xf32, #tpu.memory_space<vmem>>, %arg5: memref<1x64x128xf32, #tpu.memory_space<vmem>>) attributes {dimension_semantics = [#tpu.dimension_semantics<parallel>], iteration_bounds = array<i64: 2>, scalar_prefetch = 0 : i64, scratch_operands = 0 : i64, tpu.core_type = #tpu.core_type<tc>, window_params = [{transform_indices = @transform_0, window_bounds = array<i64: 1, 64, 128>}, {pipeline_mode = #tpu.pipeline_mode<synchronous>, transform_indices = @transform_1, window_bounds = array<i64: 128, 384>}, {pipeline_mode = #tpu.pipeline_mode<synchronous>, transform_indices = @transform_2, window_bounds = array<i64: 128, 128>}, {pipeline_mode = #tpu.pipeline_mode<synchronous>, transform_indices = @transform_3, window_bounds = array<i64: 1, 128>}, {transform_indices = @transform_4, window_bounds = array<i64: 1, 64, 128>}]} {
    %c0 = arith.constant 0 : index
    %c0_0 = arith.constant 0 : index
    %c0_1 = arith.constant 0 : index
    %0 = vector.load %arg1[%c0, %c0_0, %c0_1] : memref<1x64x128xf32, #tpu.memory_space<vmem>>, vector<1x64x128xf32>
    %1 = vector.shape_cast %0 : vector<1x64x128xf32> to vector<64x128xf32>
    %2 = arith.truncf %1 : vector<64x128xf32> to vector<64x128xbf16>
    %c0_2 = arith.constant 0 : index
    %c0_3 = arith.constant 0 : index
    %3 = vector.load %arg2[%c0_2, %c0_3] : memref<128x384xbf16, #tpu.memory_space<vmem>>, vector<128x384xbf16>
    %cst = arith.constant dense<0.000000e+00> : vector<64x384xf32>
    %4 = tpu.matmul %2, %3, %cst {dimension_numbers = #tpu.dot_dimension_numbers<[1], [0], [0], [1], [0, 0, 1, 1], [], []>} : vector<64x128xbf16>, vector<128x384xbf16>, vector<64x384xf32> -> vector<64x384xf32>
    %5 = vector.extract_strided_slice %4 {offsets = [0, 0], sizes = [64, 128], strides = [1, 1]} : vector<64x384xf32> to vector<64x128xf32>
    %6 = arith.truncf %5 : vector<64x128xf32> to vector<64x128xbf16>
    %7 = vector.extract_strided_slice %4 {offsets = [0, 128], sizes = [64, 128], strides = [1, 1]} : vector<64x384xf32> to vector<64x128xf32>
    %8 = arith.truncf %7 : vector<64x128xf32> to vector<64x128xbf16>
    %9 = vector.extract_strided_slice %4 {offsets = [0, 256], sizes = [64, 128], strides = [1, 1]} : vector<64x384xf32> to vector<64x128xf32>
    %10 = arith.truncf %9 : vector<64x128xf32> to vector<64x128xbf16>
    %c0_4 = arith.constant 0 : index
    %c0_5 = arith.constant 0 : index
    %11 = vector.load %arg3[%c0_4, %c0_5] : memref<128x128xbf16, #tpu.memory_space<vmem>>, vector<128x128xbf16>
    %c0_6 = arith.constant 0 : index
    %c0_7 = arith.constant 0 : index
    %12 = vector.load %arg4[%c0_6, %c0_7] : memref<1x128xf32, #tpu.memory_space<vmem>>, vector<1x128xf32>
    %13 = tpu.iota {dimensions = array<i32: 0>} : vector<64x64xi32>
    %14 = tpu.iota {dimensions = array<i32: 1>} : vector<64x64xi32>
    %15 = arith.cmpi sle, %14, %13 : vector<64x64xi32>
    %cst_8 = arith.constant 0.000000e+00 : f32
    %16 = vector.broadcast %cst_8 : f32 to vector<64x128xf32>
    %17 = vector.extract_strided_slice %6 {offsets = [0, 0], sizes = [64, 32], strides = [1, 1]} : vector<64x128xbf16> to vector<64x32xbf16>
    %18 = vector.extract_strided_slice %8 {offsets = [0, 0], sizes = [64, 32], strides = [1, 1]} : vector<64x128xbf16> to vector<64x32xbf16>
    %19 = vector.extract_strided_slice %10 {offsets = [0, 0], sizes = [64, 32], strides = [1, 1]} : vector<64x128xbf16> to vector<64x32xbf16>
    %cst_9 = arith.constant dense<0.000000e+00> : vector<64x64xf32>
    %20 = tpu.matmul %17, %18, %cst_9 {dimension_numbers = #tpu.dot_dimension_numbers<[1], [1], [0], [0], [0, 0, 1, 0], [], []>} : vector<64x32xbf16>, vector<64x32xbf16>, vector<64x64xf32> -> vector<64x64xf32>
    %cst_10 = arith.constant -1.000000e+30 : f32
    %21 = vector.broadcast %cst_10 : f32 to vector<64x64xf32>
    %22 = arith.select %15, %20, %21 : vector<64x64xi1>, vector<64x64xf32>
    %cst_11 = arith.constant dense<0xFF800000> : vector<64xf32>
    %23 = vector.multi_reduction <maximumf>, %22, %cst_11 [1] : vector<64x64xf32> to vector<64xf32>
    %24 = vector.shape_cast %23 : vector<64xf32> to vector<64x1xf32>
    %25 = vector.broadcast %24 : vector<64x1xf32> to vector<64x64xf32>
    %26 = arith.subf %22, %25 : vector<64x64xf32>
    %27 = math.exp %26 : vector<64x64xf32>
    %cst_12 = arith.constant dense<0.000000e+00> : vector<64xf32>
    %28 = vector.multi_reduction <add>, %27, %cst_12 [1] : vector<64x64xf32> to vector<64xf32>
    %29 = vector.shape_cast %28 : vector<64xf32> to vector<64x1xf32>
    %30 = tpu.reciprocal %29 {approx = true} : vector<64x1xf32> -> vector<64x1xf32>
    %31 = vector.broadcast %30 : vector<64x1xf32> to vector<64x64xf32>
    %32 = arith.mulf %27, %31 : vector<64x64xf32>
    %33 = arith.truncf %32 : vector<64x64xf32> to vector<64x64xbf16>
    %cst_13 = arith.constant dense<0.000000e+00> : vector<64x32xf32>
    %34 = tpu.matmul %33, %19, %cst_13 {dimension_numbers = #tpu.dot_dimension_numbers<[1], [0], [0], [1], [0, 0, 1, 1], [], []>} : vector<64x64xbf16>, vector<64x32xbf16>, vector<64x32xf32> -> vector<64x32xf32>
    %35 = arith.truncf %34 : vector<64x32xf32> to vector<64x32xbf16>
    %36 = vector.extract_strided_slice %11 {offsets = [0, 0], sizes = [32, 128], strides = [1, 1]} : vector<128x128xbf16> to vector<32x128xbf16>
    %cst_14 = arith.constant dense<0.000000e+00> : vector<64x128xf32>
    %37 = tpu.matmul %35, %36, %cst_14 {dimension_numbers = #tpu.dot_dimension_numbers<[1], [0], [0], [1], [0, 0, 1, 1], [], []>} : vector<64x32xbf16>, vector<32x128xbf16>, vector<64x128xf32> -> vector<64x128xf32>
    %38 = arith.addf %16, %37 : vector<64x128xf32>
    %39 = vector.extract_strided_slice %6 {offsets = [0, 32], sizes = [64, 32], strides = [1, 1]} : vector<64x128xbf16> to vector<64x32xbf16>
    %40 = vector.extract_strided_slice %8 {offsets = [0, 32], sizes = [64, 32], strides = [1, 1]} : vector<64x128xbf16> to vector<64x32xbf16>
    %41 = vector.extract_strided_slice %10 {offsets = [0, 32], sizes = [64, 32], strides = [1, 1]} : vector<64x128xbf16> to vector<64x32xbf16>
    %cst_15 = arith.constant dense<0.000000e+00> : vector<64x64xf32>
    %42 = tpu.matmul %39, %40, %cst_15 {dimension_numbers = #tpu.dot_dimension_numbers<[1], [1], [0], [0], [0, 0, 1, 0], [], []>} : vector<64x32xbf16>, vector<64x32xbf16>, vector<64x64xf32> -> vector<64x64xf32>
    %cst_16 = arith.constant -1.000000e+30 : f32
    %43 = vector.broadcast %cst_16 : f32 to vector<64x64xf32>
    %44 = arith.select %15, %42, %43 : vector<64x64xi1>, vector<64x64xf32>
    %cst_17 = arith.constant dense<0xFF800000> : vector<64xf32>
    %45 = vector.multi_reduction <maximumf>, %44, %cst_17 [1] : vector<64x64xf32> to vector<64xf32>
    %46 = vector.shape_cast %45 : vector<64xf32> to vector<64x1xf32>
    %47 = vector.broadcast %46 : vector<64x1xf32> to vector<64x64xf32>
    %48 = arith.subf %44, %47 : vector<64x64xf32>
    %49 = math.exp %48 : vector<64x64xf32>
    %cst_18 = arith.constant dense<0.000000e+00> : vector<64xf32>
    %50 = vector.multi_reduction <add>, %49, %cst_18 [1] : vector<64x64xf32> to vector<64xf32>
    %51 = vector.shape_cast %50 : vector<64xf32> to vector<64x1xf32>
    %52 = tpu.reciprocal %51 {approx = true} : vector<64x1xf32> -> vector<64x1xf32>
    %53 = vector.broadcast %52 : vector<64x1xf32> to vector<64x64xf32>
    %54 = arith.mulf %49, %53 : vector<64x64xf32>
    %55 = arith.truncf %54 : vector<64x64xf32> to vector<64x64xbf16>
    %cst_19 = arith.constant dense<0.000000e+00> : vector<64x32xf32>
    %56 = tpu.matmul %55, %41, %cst_19 {dimension_numbers = #tpu.dot_dimension_numbers<[1], [0], [0], [1], [0, 0, 1, 1], [], []>} : vector<64x64xbf16>, vector<64x32xbf16>, vector<64x32xf32> -> vector<64x32xf32>
    %57 = arith.truncf %56 : vector<64x32xf32> to vector<64x32xbf16>
    %58 = vector.extract_strided_slice %11 {offsets = [32, 0], sizes = [32, 128], strides = [1, 1]} : vector<128x128xbf16> to vector<32x128xbf16>
    %cst_20 = arith.constant dense<0.000000e+00> : vector<64x128xf32>
    %59 = tpu.matmul %57, %58, %cst_20 {dimension_numbers = #tpu.dot_dimension_numbers<[1], [0], [0], [1], [0, 0, 1, 1], [], []>} : vector<64x32xbf16>, vector<32x128xbf16>, vector<64x128xf32> -> vector<64x128xf32>
    %60 = arith.addf %38, %59 : vector<64x128xf32>
    %61 = vector.extract_strided_slice %6 {offsets = [0, 64], sizes = [64, 32], strides = [1, 1]} : vector<64x128xbf16> to vector<64x32xbf16>
    %62 = vector.extract_strided_slice %8 {offsets = [0, 64], sizes = [64, 32], strides = [1, 1]} : vector<64x128xbf16> to vector<64x32xbf16>
    %63 = vector.extract_strided_slice %10 {offsets = [0, 64], sizes = [64, 32], strides = [1, 1]} : vector<64x128xbf16> to vector<64x32xbf16>
    %cst_21 = arith.constant dense<0.000000e+00> : vector<64x64xf32>
    %64 = tpu.matmul %61, %62, %cst_21 {dimension_numbers = #tpu.dot_dimension_numbers<[1], [1], [0], [0], [0, 0, 1, 0], [], []>} : vector<64x32xbf16>, vector<64x32xbf16>, vector<64x64xf32> -> vector<64x64xf32>
    %cst_22 = arith.constant -1.000000e+30 : f32
    %65 = vector.broadcast %cst_22 : f32 to vector<64x64xf32>
    %66 = arith.select %15, %64, %65 : vector<64x64xi1>, vector<64x64xf32>
    %cst_23 = arith.constant dense<0xFF800000> : vector<64xf32>
    %67 = vector.multi_reduction <maximumf>, %66, %cst_23 [1] : vector<64x64xf32> to vector<64xf32>
    %68 = vector.shape_cast %67 : vector<64xf32> to vector<64x1xf32>
    %69 = vector.broadcast %68 : vector<64x1xf32> to vector<64x64xf32>
    %70 = arith.subf %66, %69 : vector<64x64xf32>
    %71 = math.exp %70 : vector<64x64xf32>
    %cst_24 = arith.constant dense<0.000000e+00> : vector<64xf32>
    %72 = vector.multi_reduction <add>, %71, %cst_24 [1] : vector<64x64xf32> to vector<64xf32>
    %73 = vector.shape_cast %72 : vector<64xf32> to vector<64x1xf32>
    %74 = tpu.reciprocal %73 {approx = true} : vector<64x1xf32> -> vector<64x1xf32>
    %75 = vector.broadcast %74 : vector<64x1xf32> to vector<64x64xf32>
    %76 = arith.mulf %71, %75 : vector<64x64xf32>
    %77 = arith.truncf %76 : vector<64x64xf32> to vector<64x64xbf16>
    %cst_25 = arith.constant dense<0.000000e+00> : vector<64x32xf32>
    %78 = tpu.matmul %77, %63, %cst_25 {dimension_numbers = #tpu.dot_dimension_numbers<[1], [0], [0], [1], [0, 0, 1, 1], [], []>} : vector<64x64xbf16>, vector<64x32xbf16>, vector<64x32xf32> -> vector<64x32xf32>
    %79 = arith.truncf %78 : vector<64x32xf32> to vector<64x32xbf16>
    %80 = vector.extract_strided_slice %11 {offsets = [64, 0], sizes = [32, 128], strides = [1, 1]} : vector<128x128xbf16> to vector<32x128xbf16>
    %cst_26 = arith.constant dense<0.000000e+00> : vector<64x128xf32>
    %81 = tpu.matmul %79, %80, %cst_26 {dimension_numbers = #tpu.dot_dimension_numbers<[1], [0], [0], [1], [0, 0, 1, 1], [], []>} : vector<64x32xbf16>, vector<32x128xbf16>, vector<64x128xf32> -> vector<64x128xf32>
    %82 = arith.addf %60, %81 : vector<64x128xf32>
    %83 = vector.extract_strided_slice %6 {offsets = [0, 96], sizes = [64, 32], strides = [1, 1]} : vector<64x128xbf16> to vector<64x32xbf16>
    %84 = vector.extract_strided_slice %8 {offsets = [0, 96], sizes = [64, 32], strides = [1, 1]} : vector<64x128xbf16> to vector<64x32xbf16>
    %85 = vector.extract_strided_slice %10 {offsets = [0, 96], sizes = [64, 32], strides = [1, 1]} : vector<64x128xbf16> to vector<64x32xbf16>
    %cst_27 = arith.constant dense<0.000000e+00> : vector<64x64xf32>
    %86 = tpu.matmul %83, %84, %cst_27 {dimension_numbers = #tpu.dot_dimension_numbers<[1], [1], [0], [0], [0, 0, 1, 0], [], []>} : vector<64x32xbf16>, vector<64x32xbf16>, vector<64x64xf32> -> vector<64x64xf32>
    %cst_28 = arith.constant -1.000000e+30 : f32
    %87 = vector.broadcast %cst_28 : f32 to vector<64x64xf32>
    %88 = arith.select %15, %86, %87 : vector<64x64xi1>, vector<64x64xf32>
    %cst_29 = arith.constant dense<0xFF800000> : vector<64xf32>
    %89 = vector.multi_reduction <maximumf>, %88, %cst_29 [1] : vector<64x64xf32> to vector<64xf32>
    %90 = vector.shape_cast %89 : vector<64xf32> to vector<64x1xf32>
    %91 = vector.broadcast %90 : vector<64x1xf32> to vector<64x64xf32>
    %92 = arith.subf %88, %91 : vector<64x64xf32>
    %93 = math.exp %92 : vector<64x64xf32>
    %cst_30 = arith.constant dense<0.000000e+00> : vector<64xf32>
    %94 = vector.multi_reduction <add>, %93, %cst_30 [1] : vector<64x64xf32> to vector<64xf32>
    %95 = vector.shape_cast %94 : vector<64xf32> to vector<64x1xf32>
    %96 = tpu.reciprocal %95 {approx = true} : vector<64x1xf32> -> vector<64x1xf32>
    %97 = vector.broadcast %96 : vector<64x1xf32> to vector<64x64xf32>
    %98 = arith.mulf %93, %97 : vector<64x64xf32>
    %99 = arith.truncf %98 : vector<64x64xf32> to vector<64x64xbf16>
    %cst_31 = arith.constant dense<0.000000e+00> : vector<64x32xf32>
    %100 = tpu.matmul %99, %85, %cst_31 {dimension_numbers = #tpu.dot_dimension_numbers<[1], [0], [0], [1], [0, 0, 1, 1], [], []>} : vector<64x64xbf16>, vector<64x32xbf16>, vector<64x32xf32> -> vector<64x32xf32>
    %101 = arith.truncf %100 : vector<64x32xf32> to vector<64x32xbf16>
    %102 = vector.extract_strided_slice %11 {offsets = [96, 0], sizes = [32, 128], strides = [1, 1]} : vector<128x128xbf16> to vector<32x128xbf16>
    %cst_32 = arith.constant dense<0.000000e+00> : vector<64x128xf32>
    %103 = tpu.matmul %101, %102, %cst_32 {dimension_numbers = #tpu.dot_dimension_numbers<[1], [0], [0], [1], [0, 0, 1, 1], [], []>} : vector<64x32xbf16>, vector<32x128xbf16>, vector<64x128xf32> -> vector<64x128xf32>
    %104 = arith.addf %82, %103 : vector<64x128xf32>
    %105 = vector.broadcast %12 : vector<1x128xf32> to vector<64x128xf32>
    %106 = arith.addf %104, %105 : vector<64x128xf32>
    %c0_33 = arith.constant 0 : index
    %c0_34 = arith.constant 0 : index
    %c0_35 = arith.constant 0 : index
    %107 = vector.load %arg5[%c0_33, %c0_34, %c0_35] : memref<1x64x128xf32, #tpu.memory_space<vmem>>, vector<1x64x128xf32>
    %108 = vector.shape_cast %107 : vector<1x64x128xf32> to vector<64x128xf32>
    %109 = vector.shape_cast %106 : vector<64x128xf32> to vector<1x64x128xf32>
    tpu.vector_store %arg5[%c0_33, %c0_34, %c0_35], %109 {strides = array<i32>} : memref<1x64x128xf32, #tpu.memory_space<vmem>>, vector<1x64x128xf32>,
    return
  }
  func.func @transform_0(%arg0: i32) -> (i32, i32, i32) {
    %c0_i32 = arith.constant 0 : i32
    %c0_i32_0 = arith.constant 0 : i32
    %c0_i32_1 = arith.constant 0 : i32
    return %arg0, %c0_i32, %c0_i32_0 : i32, i32, i32
  }
  func.func @transform_1(%arg0: i32) -> (i32, i32) {
    %c0_i32 = arith.constant 0 : i32
    %c0_i32_0 = arith.constant 0 : i32
    %c0_i32_1 = arith.constant 0 : i32
    return %c0_i32, %c0_i32_0 : i32, i32
  }
  func.func @transform_2(%arg0: i32) -> (i32, i32) {
    %c0_i32 = arith.constant 0 : i32
    %c0_i32_0 = arith.constant 0 : i32
    %c0_i32_1 = arith.constant 0 : i32
    return %c0_i32, %c0_i32_0 : i32, i32
  }
  func.func @transform_3(%arg0: i32) -> (i32, i32) {
    %c0_i32 = arith.constant 0 : i32
    %c0_i32_0 = arith.constant 0 : i32
    %c0_i32_1 = arith.constant 0 : i32
    return %c0_i32, %c0_i32_0 : i32, i32
  }
  func.func @transform_4(%arg0: i32) -> (i32, i32, i32) {
    %c0_i32 = arith.constant 0 : i32
    %c0_i32_0 = arith.constant 0 : i32
    %c0_i32_1 = arith.constant 0 : i32
    return %arg0, %c0_i32, %c0_i32_0 : i32, i32, i32
  }
}

</mosaic_0001>

<bundles_post_ra>
// kernel: multi_head_attention.1
= control target key start
LH: loop header
LB: loop body
LE: loop exit
PB: predicated region body
PF: predicated region fallthrough
CT: control target
= control target key end

     0   :  { %9 = vsyncpa [#allocation3], 0  ;;  %s4053_s0 = inlined_call_operand.hbm [shape: f32[2,64,128], index: 0, kind: input, shape index: {}]   ;;  %s4054_s1 = inlined_call_operand.hbm [shape: bf16[128,384], index: 1, kind: input, shape index: {}]   ;;  %s4055_s2 = inlined_call_operand.hbm [shape: bf16[128,128], index: 2, kind: input, shape index: {}]   ;;  %s4056_s3 = inlined_call_operand.vmem [shape: f32[1,128], index: 3, kind: input, shape index: {}]   ;;  %s4057_s4 = inlined_call_operand.hbm [shape: f32[2,64,128], index: 4, kind: output, shape index: {}]  }
   0x1   :  { %11 = vsyncpa [#allocation3 + $0x1], 0 }
   0x2   :  { %12 = vsyncpa [#allocation6], 0 }
   0x3   :  { %13 = vsyncpa [#allocation4], 0 }
   0x4   :  { %15 = vsyncpa [#allocation4 + $0x1], 0  ;;  %s3169_s15 = smov 0   ;;  %s3171_s16 = smov 0  }
   0x5   :  { %s3173_s17 = smov 0   ;;  %s3175_s18 = smov 0  }
   0x6 LB: > { %s3190_s19 = sadd.s32 4294967295, %s3126_s18   ;;  %s2282_s20 = sadd.s32 4294967294, %s3126_s18   ;;  %s3126_s18 = sphi %s3175_s18, %s4077_s18   ;;  %s3122_s17 = sphi %s3173_s17, %s4076_s17   ;;  %s3118_s16 = sphi %s3171_s16, %s4075_s16   ;;  %s3114_s15 = sphi %s3169_s15, %s4074_s15  }
   0x7   : > { %p41_p0 = scmp.ne.s32.totalorder %s3118_s16, %s3114_s15  ;;  %p4058_p1 = scmp.eq.s32.totalorder %s3190_s19, 0 }
   0x8   : > { %p134_p3 = scmp.eq.s32.totalorder %s2282_s20, 1  ;;  %p2283_p5 = scmp.ge.s32.totalorder %s3126_s18, 1 }
   0x9   : > { %p3199_p4 = por %p4058_p1, %p41_p0  ;;  %p141_p7 = scmp.lt.s32.totalorder %s3126_s18, 3 }
   0xa   : > { %p3204_p6 = por %p134_p3, %p41_p0  ;;  %s3128_s24 = smov [#allocation5]  }
   0xb   : > { %s4061_s21 = scalar_select %p3199_p4, 1, 0 }
   0xc   : > { %s4062_s22 = scalar_select %p3204_p6, 1, 0 }
   0xd   : > { %p3209_p8 = pnand %p2283_p5, %p141_p7  ;;  %s153_s25 = sshll.u32 %s3128_s24, 4  ;;  %s3213_s25 = int_to_ptr.vmem [resolvable:$true] %s153_s25 }
   0xe   : > { %s3129_s27 = smov [#allocation7]   ;;  %s2970_s5 = scalar_lea.hbm %s4054_s1, 3072 }
   0xf   : > { %p2735_p9 = pneg %p3209_p8  ;;  %s166_s28 = sshll.u32 %s3129_s27, 4  ;;  %s3224_s28 = int_to_ptr.vmem [resolvable:$true] %s166_s28 }
  0x10   : > { %p2971_p12 = scmp.ne.s32.totalorder %s4054_s1, %s2970_s5  ;;  %p2977_p5 = scmp.lt.u32.totalorder %s2970_s5, %s4054_s1 }
  0x11   : > { %p3220_p11 = pnand %p2735_p9, %p4058_p1 }
  0x13   : > { %p2972_p13 = pneg %p3220_p11 }
  0x15   : > { %p2973_p0 = pnand %p2972_p13, %p2971_p12 }
  0x17   : > { %p2974_p3 = pneg %p2973_p0 }
  0x19   : > { %p2979_p7 = pnand %p2977_p5, %p2974_p3 }
  0x1b   : > { %2982 = shalt.err (!%p2979_p7)
}
  0x1c   : > { %s2983_s10 = scalar_lea.vmem %s3213_s25, 3072  ;;  %p2991_p2 = scmp.lt.s32.totalorder %s3213_s25, %s3213_s25 }
  0x1d   : > { %p2984_p9 = scmp.ne.s32.totalorder %s3213_s25, %s2983_s10  ;;  %p2992_p12 = scmp.lt.s32.totalorder %s2983_s10, %s2983_s10 }
  0x1f   : > { %p2986_p10 = pnand %p2984_p9, %p2972_p13  ;;  %p2993_p0 = por %p2992_p12, %p2991_p2 }
  0x21   : > { %p2987_p1 = pneg %p2986_p10 }
  0x23   : > { %p2994_p6 = pnand %p2993_p0, %p2987_p1 }
  0x25   : > { %2997 = shalt.err (!%p2994_p6)
}
  0x26   : > { %s3130_s11 = smov 192   ;;  %s3131_s12 = smov 12  }
  0x27   : > { %2738 = dma.hbm_to_vmem [thread:$0]  (!%p3220_p11), %s4054_s1, 3072, %s3213_s25, [#allocation6], %s3130_s11, %s3130_s11, %s3131_s12  }
  0x28   : > { %s2998_s27 = scalar_lea.hbm %s4055_s2, 1024 }
  0x29   : > { %p2999_p2 = scmp.ne.s32.totalorder %s4055_s2, %s2998_s27  ;;  %p3005_p10 = scmp.lt.u32.totalorder %s2998_s27, %s4055_s2 }
  0x2b   : > { %p3001_p1 = pnand %p2999_p2, %p2972_p13 }
  0x2d   : > { %p3002_p6 = pneg %p3001_p1 }
  0x2f   : > { %p3007_p3 = pnand %p3005_p10, %p3002_p6 }
  0x31   : > { %3010 = shalt.err (!%p3007_p3)
}
  0x32   : > { %s3011_s25 = scalar_lea.vmem %s3224_s28, 1024  ;;  %p3019_p12 = scmp.lt.s32.totalorder %s3224_s28, %s3224_s28 }
  0x33   : > { %p3012_p5 = scmp.ne.s32.totalorder %s3224_s28, %s3011_s25  ;;  %p3020_p0 = scmp.lt.s32.totalorder %s3011_s25, %s3011_s25 }
  0x35   : > { %p3014_p7 = pnand %p3012_p5, %p2972_p13  ;;  %p3021_p2 = por %p3020_p0, %p3019_p12 }
  0x37   : > { %p3015_p9 = pneg %p3014_p7 }
  0x39   : > { %p3022_p1 = pnand %p3021_p2, %p3015_p9 }
  0x3b   : > { %3025 = shalt.err (!%p3022_p1)
}
  0x3c   : > { %s3132_s7 = smov 64   ;;  %s3133_s8 = smov 4  }
  0x3d   : > { %2741 = dma.hbm_to_vmem [thread:$0]  (!%p3220_p11), %s4055_s2, 1024, %s3224_s28, [#allocation6], %s3132_s7, %s3132_s7, %s3133_s8  }
  0x3e   : > { %s3279_s11 = sadd.s32 1, %s3126_s18   ;;  %s28_s13 = sadd.s32 1, %s3122_s17 }
  0x3f   : > { %s25_s12 = ssub.s32 %s3126_s18, %s3279_s11  ;;  %p35_p6 = scmp.ne.s32.totalorder %s3122_s17, %s3118_s16 }
  0x40   : > { %p26_p13 = scmp.eq.s32.totalorder %s25_s12, 0  ;;  %p36_p10 = scmp.eq.s32.totalorder %s3126_s18, 0 }
  0x41   : > { %p4065_p5 = scmp.eq.s32.totalorder %s3190_s19, 1  ;;  %p2752_p9 = scmp.lt.s32.totalorder %s3126_s18, 2 }
  0x42   : > { %s3288_s14 = scalar_select %p26_p13, %s3122_s17, %s28_s13  }
  0x43   : > { %p37_p3 = por %p36_p10, %p35_p6  ;;  %p3292_p7 = por %p4065_p5, %p35_p6 }
  0x44   : > { %s183_s26 = sand.u32 1, %s3122_s17   ;;  %s2381_s28 = sshll.u32 %s3126_s18, 10 }
  0x45   : > { %s4066_s20 = scalar_select %p3292_p7, 1, 0 }
  0x46   : > { %s2287_s24 = sshll.u32 %s183_s26, 6  ;;  %s3302_s30 = scalar_lea.hbm %s4053_s0, %s2381_s28 }
  0x47   : > { %s187_s5 = scalar_lea.vmem [#allocation2], %s2287_s24  ;;  %p3306_p11 = pnand %p2752_p9, %p37_p3 }
  0x48   : > { %s194_s6 = sshll.u32 %s187_s5, 4  ;;  %s3310_s7 = scalar_lea.sflag [#allocation3], %s183_s26  ;;  %s3304_s6 = int_to_ptr.vmem [resolvable:$true] %s194_s6 }
  0x49   : > { %s3026_s8 = scalar_lea.hbm %s3302_s30, 1024  ;;  %p3028_p0 = pneg %p3306_p11 }
  0x4a   : > { %p3027_p12 = scmp.ne.s32.totalorder %s3302_s30, %s3026_s8  ;;  %s3031_s12 = scalar_lea.hbm %s4053_s0, 2048 }
  0x4b   : > { %p3032_p13 = scmp.lt.u32.totalorder %s3302_s30, %s4053_s0  ;;  %p3033_p6 = scmp.lt.u32.totalorder %s3031_s12, %s3026_s8 }
  0x4c   : > { %p3029_p2 = pnand %p3028_p0, %p3027_p12  ;;  %p3035_p3 = scmp.lt.u32.totalorder %s3026_s8, %s3302_s30 }
  0x4d   : > { %p3034_p10 = por %p3033_p6, %p3032_p13 }
  0x4e   : > { %p3030_p1 = pneg %p3029_p2 }
  0x4f   : > { %p3036_p5 = por %p3035_p3, %p3034_p10 }
  0x51   : > { %p3037_p9 = pnand %p3036_p5, %p3030_p1 }
  0x53   : > { %3040 = shalt.err (!%p3037_p9)
}
  0x54   : > { %s3041_s26 = scalar_lea.vmem %s3304_s6, 1024  ;;  %s3134_s28 = smov [#allocation2]  }
  0x55   : > { %p3042_p12 = scmp.ne.s32.totalorder %s3304_s6, %s3041_s26  ;;  %s3046_s27 = sshll.u32 %s3134_s28, 4  ;;  %s3047_s27 = int_to_ptr.vmem [resolvable:$false] %s3046_s27 }
  0x56   : > { %s3048_s29 = scalar_lea.vmem %s3047_s27, 2048  ;;  %p3049_p4 = scmp.lt.s32.totalorder %s3304_s6, %s3047_s27 }
  0x57   : > { %p3044_p2 = pnand %p3042_p12, %p3028_p0  ;;  %p3050_p13 = scmp.lt.s32.totalorder %s3048_s29, %s3041_s26 }
  0x59   : > { %p3045_p7 = pneg %p3044_p2  ;;  %p3051_p6 = por %p3050_p13, %p3049_p4 }
  0x5b   : > { %p3052_p10 = pnand %p3051_p6, %p3045_p7 }
  0x5d   : > { %3055 = shalt.err (!%p3052_p10)
}
  0x5e   : > { %s3135_s5 = smov 128   ;;  %s3136_s8 = smov 8  }
  0x5f   : > { %2745 = dma.hbm_to_vmem [thread:$0]  (!%p3306_p11), %s3302_s30, 1024, %s3304_s6, %s3310_s7, %s3135_s5, %s3135_s5, %s3136_s8  }
  0x60   : > { %206 = sbr.rel (%p3209_p8) target bundleno = 2932 (0xb74), region = 36  ;;  %s3341_s9 = sand.u32 (!%p3209_p8), 1, %s3118_s16  }
  0x61   : > { %s2291_s10 = sshll.u32 (!%p3209_p8), %s3341_s9, 6  ;;  %s209_s12 = scalar_lea.sflag (!%p3209_p8), [#allocation3], %s3341_s9 }
  0x62   : > { %s3347_s13 = scalar_lea.vmem (!%p3209_p8), [#allocation2], %s2291_s10  ;;  %p4068_p4 = scmp.ne.s32.totalorder (!%p3209_p8), %s4061_s21, 0 }
  0x67   : > { %3101 = dma.done.wait (%p4068_p4), %s209_s12, 1024  }
  0x68   : > { %3103 = vsyncadd (%p4068_p4), %s209_s12, 4294966272  ;;  %p4069_p7 = scmp.eq.s32.totalorder %s3190_s19, 0 }
  0x6a   : > { %3105 = dma.done.wait (%p4069_p7), [#allocation6], 4096   ;;  %p4070_p8 = pmov %p4069_p7 }
  0x6b   : > { %v3137_v0 = vmov 0   ;;  %v2802_v1 = vld [vmem:[#allocation5 + $0x4] ss:$12 sps:$4 sm:$0xff]   ;;  %v2804_v2 = vld [vmem:[#allocation5] ss:$12 sps:$4 sm:$0xff]   ;;  %v249_v21 = vld [vmem:[%s3347_s13 + $0x18] sm:$0xff] }
  0x6c   : > { %3107 = vsyncadd (%p4070_p8), [#allocation6], 4294963200  ;;  %450 = vmatprep.mubr.bf16.mxu0 %v3137_v0  ;;  %418 = vmatprep.subr.bf16.mxu0 %v2802_v1  ;;  %v2805_v3 = vld [vmem:[#allocation5 + $0x1c] ss:$12 sps:$4 sm:$0xff]   ;;  %v2807_v4 = vld [vmem:[#allocation5 + $0x18] ss:$12 sps:$4 sm:$0xff]   ;;  %v585_v1 = vlaneseq }
  0x6d   : > { %419 = vmatpush1.bf16.msra.mxu0 %v2804_v2  ;;  %v2808_v5 = vld [vmem:[#allocation5 + $0x34] ss:$12 sps:$4 sm:$0xff]   ;;  %v2810_v6 = vld [vmem:[#allocation5 + $0x30] ss:$12 sps:$4 sm:$0xff]   ;;  %v2811_v7 = vld [vmem:[#allocation5 + $0x4c] ss:$12 sps:$4 sm:$0xff]  }
  0x6e   : > { %420 = vmatprep.subr.bf16.mxu0 %v2805_v3  ;;  %v246_v8 = vld [vmem:[%s3347_s13] sm:$0xff]  ;;  %v2813_v9 = vld [vmem:[#allocation5 + $0x48] ss:$12 sps:$4 sm:$0xff]   ;;  %v2822_v17 = vld [vmem:[#allocation5 + $0x90] ss:$12 sps:$4 sm:$0xff]   ;;  %vm604_vm0 = vcmask 261120  }
  0x6f   : > { %v247_v10 = vld [vmem:[%s3347_s13 + $0x8] sm:$0xff]  ;;  %v2814_v11 = vld [vmem:[#allocation5 + $0x64] ss:$12 sps:$4 sm:$0xff]   ;;  %v2820_v16 = vld [vmem:[#allocation5 + $0x94] ss:$12 sps:$4 sm:$0xff]   ;;  %v3417_v2 = vshrl.u32 %v585_v1, 7 }
  0x70   : > { %v254_v12 = vpack.c.bf16 %v247_v10, %v246_v8  ;;  %v2816_v13 = vld [vmem:[#allocation5 + $0x60] ss:$12 sps:$4 sm:$0xff]   ;;  %v2817_v14 = vld [vmem:[#allocation5 + $0x7c] ss:$12 sps:$4 sm:$0xff]   ;;  %v2819_v15 = vld [vmem:[#allocation5 + $0x78] ss:$12 sps:$4 sm:$0xff]  }
  0x71   : > { %421 = vmatpush1.bf16.msra.mxu0 %v2807_v4  ;;  %v2823_v18 = vld [vmem:[#allocation5 + $0xac] ss:$12 sps:$4 sm:$0xff]   ;;  %v2825_v19 = vld [vmem:[#allocation5 + $0xa8] ss:$12 sps:$4 sm:$0xff]   ;;  %v250_v23 = vld [vmem:[%s3347_s13 + $0x20] sm:$0xff]  ;;  %v3420_v3 = vadd.s32 16, %v3417_v2 }
  0x72   : > { %422 = vmatprep.subr.bf16.mxu0 %v2808_v5  ;;  %2499 = vmatprep.mubr.bf16.mxu1 %v254_v12  ;;  %v248_v20 = vld [vmem:[%s3347_s13 + $0x10] sm:$0xff]  ;;  %v251_v24 = vld [vmem:[%s3347_s13 + $0x28] sm:$0xff]  ;;  %v253_v27 = vld [vmem:[%s3347_s13 + $0x38] sm:$0xff]  ;;  %v3422_v4 = vand.u32 127, %v585_v1  ;;  %v3425_v5 = vadd.s32 24, %v3417_v2  ;;  %vm702_vm3 = vcmask 523264  }
  0x73   : > { %v3361_v22 = vpack.c.bf16 %v249_v21, %v248_v20  ;;  %v3366_v25 = vpack.c.bf16 %v251_v24, %v250_v23  ;;  %v252_v26 = vld [vmem:[%s3347_s13 + $0x30] sm:$0xff]  ;;  %v2827_v58 = vld [vmem:[#allocation5 + $0x20] ss:$12 sps:$4 sm:$0xff]   ;;  %v2828_v59 = vld [vmem:[#allocation5 + $0x38] ss:$12 sps:$4 sm:$0xff]   ;;  %s3138_s21 = smov 96  }
  0x74   : > { %v3371_v28 = vpack.c.bf16 %v253_v27, %v252_v26  ;;  %v2826_v57 = vld [vmem:[#allocation5 + $0x8] ss:$12 sps:$4 sm:$0xff]   ;;  %v2829_v60 = vld [vmem:[#allocation5 + $0x50] ss:$12 sps:$4 sm:$0xff]   ;;  %v2831_v62 = vld [vmem:[#allocation5 + $0x80] ss:$12 sps:$4 sm:$0xff]   ;;  %vm598_vm1 = vcmp.le.s32.totalorder %v3422_v4, %v3420_v3  ;;  %vm596_vm2 = vcmp.le.s32.totalorder %v3422_v4, %v3417_v2  ;;  %vm599_vm4 = vcmp.le.s32.totalorder %v3422_v4, %v3425_v5 }
  0x75   : > { %423 = vmatpush1.bf16.msra.mxu0 %v2810_v6  ;;  %2483 = vmatprep.subr.bf16.mxu1 %v2826_v57  ;;  %v2830_v61 = vld [vmem:[#allocation5 + $0x68] ss:$12 sps:$4 sm:$0xff]   ;;  %v2832_v63 = vld [vmem:[#allocation5 + $0x98] ss:$12 sps:$4 sm:$0xff]   ;;  %v3428_v6 = vadd.s32 8, %v3417_v2  ;;  %s3139_s23 = smov 64  }
  0x76   : > { %424 = vmatprep.subr.bf16.mxu0 %v2811_v7  ;;  %2484 = vmatpush3.bf16.msra.mxu1 %v2826_v57  ;;  %s3140_s30 = smov 32   ;;  %s244_s7 = scalar_lea.vmem [#allocation8], %s2291_s10 }
  0x77   : > { %2485 = vmatprep.subr.bf16.mxu1 %v2827_v58  ;;  %vm597_vm5 = vcmp.le.s32.totalorder %v3422_v4, %v3428_v6  ;;  %s2190_s24 = sshll.u32 %s244_s7, 4  ;;  %s2382_s26 = sshll.u32 %s3190_s19, 10  ;;  %s4004_s24 = int_to_ptr.vmem [resolvable:$true] %s2190_s24 }
  0x78   : > { %s4009_s29 = scalar_lea.hbm %s4057_s4, %s2382_s26  ;;  %s2177_s19 = scalar_lea.sflag [#allocation4], %s3341_s9 }
  0x79   : > { %425 = vmatpush1.bf16.msra.mxu0 %v2813_v9  ;;  %s3056_s5 = scalar_lea.vmem %s4004_s24, 1024  ;;  %p4071_p0 = scmp.ne.s32.totalorder %s4066_s20, 0 }
  0x7a   : > { %426 = vmatprep.subr.bf16.mxu0 %v2814_v11  ;;  %2486 = vmatpush3.bf16.msra.mxu1 %v2827_v58  ;;  %p3057_p11 = scmp.ne.s32.totalorder %s4004_s24, %s3056_s5  ;;  %s3141_s8 = smov [#allocation8]  }
  0x7b   : > { %2487 = vmatprep.subr.bf16.mxu1 %v2828_v59  ;;  %s3060_s10 = sshll.u32 %s3141_s8, 4  ;;  %s3061_s10 = int_to_ptr.vmem [resolvable:$false] %s3060_s10 }
  0x7c   : > { %p3058_p1 = pnand %p3057_p11, %p4071_p0  ;;  %s3062_s12 = scalar_lea.vmem %s3061_s10, 2048 }
  0x7d   : > { %427 = vmatpush1.bf16.msra.mxu0 %v2816_v13  ;;  %p3063_p5 = scmp.lt.s32.totalorder %s4004_s24, %s3061_s10  ;;  %p3064_p9 = scmp.lt.s32.totalorder %s3062_s12, %s3056_s5 }
  0x7e   : > { %428 = vmatprep.subr.bf16.mxu0 %v2817_v14  ;;  %2488 = vmatpush3.bf16.msra.mxu1 %v2828_v59  ;;  %p3059_p3 = pneg %p3058_p1 }
  0x7f   : > { %2489 = vmatprep.subr.bf16.mxu1 %v2829_v60  ;;  %p3065_p12 = por %p3064_p9, %p3063_p5 }
  0x81   : > { %429 = vmatpush1.bf16.msra.mxu0 %v2819_v15  ;;  %p3066_p2 = pnand %p3065_p12, %p3059_p3 }
  0x82   : > { %430 = vmatprep.subr.bf16.mxu0 %v2820_v16  ;;  %2490 = vmatpush3.bf16.msra.mxu1 %v2829_v60  ;;  %v3450_v16 = vadd.s32 32, %v3417_v2 }
  0x83   : > { %2491 = vmatprep.subr.bf16.mxu1 %v2830_v61 }
  0x84   : > { %vm600_vm6 = vcmp.le.s32.totalorder %v3422_v4, %v3450_v16 }
  0x85   : > { %431 = vmatpush1.bf16.msra.mxu0 %v2822_v17 }
  0x86   : > { %432 = vmatprep.subr.bf16.mxu0 %v2823_v18  ;;  %2492 = vmatpush3.bf16.msra.mxu1 %v2830_v61  ;;  %v3456_v18 = vadd.s32 48, %v3417_v2 }
  0x87   : > { %2493 = vmatprep.subr.bf16.mxu1 %v2831_v62 }
  0x88   : > { %vm602_vm7 = vcmp.le.s32.totalorder %v3422_v4, %v3456_v18 }
  0x89   : > { %433 = vmatpush1.bf16.msra.mxu0 %v2825_v19  ;;  %v3459_v19 = vadd.s32 40, %v3417_v2 }
  0x8a   : > { %2494 = vmatpush3.bf16.msra.mxu1 %v2831_v62 }
  0x8b   : > { %2495 = vmatprep.subr.bf16.mxu1 %v2832_v63  ;;  %vm601_vm8 = vcmp.le.s32.totalorder %v3422_v4, %v3459_v19 }
  0x8c   : > { %451 = vmatmul.mubr.bf16.vlgmr.msra.gmra.mrb[0].mxu0 %v254_v12 }
  0x8d   : > { %460 = vmatprep.mubr.bf16.mxu0 %v3137_v0 }
  0x8e   : > { %2496 = vmatpush3.bf16.msra.mxu1 %v2832_v63 }
  0x94   : > { %461 = vmatmul.mubr.bf16.gmra.mrb[4].mxu0 %v3361_v22 }
  0x95   : > { %470 = vmatprep.mubr.bf16.mxu0 %v3137_v0 }
  0x9c   : > { %471 = vmatmul.mubr.bf16.gmra.mrb[8].mxu0 %v3366_v25 }
  0x9d   : > { %480 = vmatprep.mubr.bf16.mxu0 %v3137_v0  ;;  %v2833_v0 = vld [vmem:[#allocation5 + $0xb0] ss:$12 sps:$4 sm:$0xff]  }
  0x9e   : > { %2497 = vmatprep.subr.bf16.mxu1 %v2833_v0 }
  0x9f   : > { %2498 = vmatpush3.bf16.msra.mxu1 %v2833_v0 }
  0xa2   : > { %2500 = vmatmul.mubr.bf16.vlgmr.msra.gmra.mrb[0].mxu1 %v3361_v22  ;;  %v3466_v22 = vadd.s32 56, %v3417_v2 }
  0xa3   : > { %2503 = vmatprep.mubr.bf16.mxu1 %v3366_v25 }
  0xa4   : > { %481 = vmatmul.mubr.bf16.gmra.mrb[12].mxu0 %v3371_v28  ;;  %vm603_vm9 = vcmp.le.s32.totalorder %v3422_v4, %v3466_v22 }
  0xaa   : > { %2504 = vmatmul.mubr.bf16.gmra.mrb[4].mxu1 %v3371_v28 }
 0x15f   : > { %v452_v29 = vpop.f32.mrb[0].mxu0 }
 0x160   : > { %v454_v30 = vpop.f32.mrb[1].mxu0 }
 0x161   : > { %v456_v31 = vpop.f32.mrb[2].mxu0 }
 0x162   : > { %v3374_v32 = vpack.c.bf16 %v456_v31, %v452_v29  ;;  %v458_v33 = vpop.f32.mrb[3].mxu0 }
 0x163   : > { %v3376_v34 = vpack.c.bf16 %v458_v33, %v454_v30 }
 0x164   : > { %2515 = vmatprep.mubr.msk.bf16.mxu0 %vm604_vm0, %v3374_v32 }
 0x165   : > { %2707 = vmatprep.subr.msk.bf16.mxu0 %vm604_vm0, %v3376_v34  ;;  %v618_v35 = vsel %vm604_vm0, %v3376_v34, 0 }
 0x166   : > { %2508 = vmatpush3.bf16.xpose.msra.mxu0 %v618_v35 }
 0x167   : > { %v462_v36 = vpop.f32.mrb[4].mxu0 }
 0x168   : > { %v464_v37 = vpop.f32.mrb[5].mxu0 }
 0x169   : > { %v466_v38 = vpop.f32.mrb[6].mxu0 }
 0x16a   : > { %v3384_v39 = vpack.c.bf16 %v466_v38, %v462_v36  ;;  %v468_v40 = vpop.f32.mrb[7].mxu0 }
 0x16b   : > { %v3386_v41 = vpack.c.bf16 %v468_v40, %v464_v37 }
 0x16d   : > { %2708 = vmatprep.subr.msk.bf16.mxu0 %vm604_vm0, %v3386_v41  ;;  %v621_v42 = vsel %vm604_vm0, %v3386_v41, 0 }
 0x16e   : > { %2510 = vmatpush3.bf16.xpose.msra.mxu0 %v621_v42 }
 0x16f   : > { %v472_v43 = vpop.f32.mrb[8].mxu0 }
 0x170   : > { %v474_v44 = vpop.f32.mrb[9].mxu0 }
 0x171   : > { %v476_v45 = vpop.f32.mrb[10].mxu0 }
 0x172   : > { %v3392_v46 = vpack.c.bf16 %v476_v45, %v472_v43  ;;  %v478_v47 = vpop.f32.mrb[11].mxu0 }
 0x173   : > { %v3394_v48 = vpack.c.bf16 %v478_v47, %v474_v44 }
 0x175   : > { %2709 = vmatprep.subr.msk.bf16.mxu0 %vm604_vm0, %v3394_v48  ;;  %v624_v49 = vsel %vm604_vm0, %v3394_v48, 0  ;;  %v2501_v37 = vpop.f32.mrb[0].mxu1 }
 0x176   : > { %2512 = vmatpush3.bf16.xpose.msra.mxu0 %v624_v49  ;;  %v525_v38 = vpop.f32.mrb[1].mxu1 }
 0x177   : > { %v482_v50 = vpop.f32.mrb[12].mxu0  ;;  %v2502_v40 = vpop.f32.mrb[2].mxu1 }
 0x178   : > { %v484_v51 = vpop.f32.mrb[13].mxu0  ;;  %v3496_v42 = vpack.c.bf16 %v2502_v40, %v2501_v37  ;;  %v528_v43 = vpop.f32.mrb[3].mxu1 }
 0x179   : > { %v486_v52 = vpop.f32.mrb[14].mxu0  ;;  %v3498_v44 = vpack.c.bf16 %v528_v43, %v525_v38 }
 0x17a   : > { %v3400_v53 = vpack.c.bf16 %v486_v52, %v482_v50  ;;  %v488_v54 = vpop.f32.mrb[15].mxu0 }
 0x17b   : > { %v3402_v55 = vpack.c.bf16 %v488_v54, %v484_v51  ;;  %2523 = vmatprep.subr.bf16.mxu1 %v3498_v44 }
 0x17c   : > { %2524 = vmatpush3.bf16.msra.mxu1 %v3498_v44 }
 0x17d   : > { %2710 = vmatprep.subr.msk.bf16.mxu0 %vm604_vm0, %v3402_v55  ;;  %v627_v56 = vsel %vm604_vm0, %v3402_v55, 0  ;;  %2525 = vmatprep.subr.bf16.mxu1 %v3496_v42 }
 0x17e   : > { %2514 = vmatpush3.bf16.xpose.msra.mxu0 %v627_v56 }
 0x180   : > { %2526 = vmatpush3.bf16.msra.mxu1 %v3496_v42 }
 0x185   : > { %2516 = vmatmul.mubr.msk.bf16.vlgmr.msra.gmra.mrb[16].mxu0 %vm604_vm0, %v3384_v39 }
 0x186   : > { %2519 = vmatprep.mubr.msk.bf16.mxu0 %vm604_vm0, %v3392_v46 }
 0x18d   : > { %2520 = vmatmul.mubr.msk.bf16.gmra.mrb[20].mxu0 %vm604_vm0, %v3400_v53 }
 0x258   : > { %v2517_v7 = vpop.f32.mrb[16].mxu0 }
 0x259   : > { %v696_v8 = vsel %vm598_vm1, %v2517_v7, -1e+30  ;;  %v663_v9 = vpop.f32.mrb[17].mxu0 }
 0x25a   : > { %v694_v10 = vsel %vm596_vm2, %v663_v9, -1e+30  ;;  %v2518_v11 = vpop.f32.mrb[18].mxu0  ;;  %v709_v12 = vsel %vm702_vm3, %v696_v8, -inf }
 0x25b   : > { %v697_v13 = vsel %vm599_vm4, %v2518_v11, -1e+30  ;;  %710 = vmax.xlane.f32.xlu1 %v709_v12  ;;  %v666_v14 = vpop.f32.mrb[19].mxu0  ;;  %v703_v15 = vsel %vm702_vm3, %v694_v10, -inf }
 0x25c   : > { %v695_v17 = vsel %vm597_vm5, %v666_v14, -1e+30  ;;  %704 = vmax.xlane.f32.xlu0 %v703_v15  ;;  %v712_v20 = vsel %vm702_vm3, %v697_v13, -inf }
 0x25d   : > { %v706_v21 = vsel %vm702_vm3, %v695_v17, -inf }
 0x25f   : > { %713 = vmax.xlane.f32.xlu1 %v712_v20 }
 0x260   : > { %707 = vmax.xlane.f32.xlu0 %v706_v21  ;;  %v2521_v23 = vpop.f32.mrb[20].mxu0 }
 0x261   : > { %v679_v24 = vpop.f32.mrb[21].mxu0  ;;  %v700_v29 = vsel %vm602_vm7, %v2521_v23, -1e+30 }
 0x262   : > { %v698_v25 = vsel %vm600_vm6, %v679_v24, -1e+30  ;;  %v2522_v26 = vpop.f32.mrb[22].mxu0  ;;  %v721_v35 = vsel %vm702_vm3, %v700_v29, -inf  ;;  %v2505_v24 = vpop.f32.mrb[4].mxu1 }
 0x263   : > { %v682_v27 = vpop.f32.mrb[23].mxu0  ;;  %v715_v28 = vsel %vm702_vm3, %v698_v25, -inf  ;;  %v3491_v33 = vsel %vm603_vm9, %v2522_v26, -1e+30 }
 0x264   : > { %v3484_v30 = vsel %vm601_vm8, %v682_v27, -1e+30  ;;  %716 = vmax.xlane.f32.xlu0 %v715_v28  ;;  %v724_v36 = vsel %vm702_vm3, %v3491_v33, -inf }
 0x265   : > { %v718_v31 = vsel %vm702_vm3, %v3484_v30, -inf }
 0x266   : > { %719 = vmax.xlane.f32.xlu1 %v718_v31 }
 0x268   : > { %722 = vmax.xlane.f32.xlu0 %v721_v35 }
 0x26a   : > { %725 = vmax.xlane.f32.xlu1 %v724_v36 }
 0x2e8   : > { %v711_v45 = vpop.xlane.xlu1 %710 }
 0x2e9   : > { %v729_v47 = vsub.f32 %v696_v8, %v711_v45  ;;  %v705_v49 = vpop.xlane.xlu0 %704 }
 0x2ea   : > { %v727_v50 = vsub.f32 %v694_v10, %v705_v49 }
 0x2eb   : > { %v739_v51 = vmul.f32 1.442695, %v729_v47 }
 0x2ec   : > { %v735_v52 = vmul.f32 1.442695, %v727_v50  ;;  %v714_v54 = vpop.xlane.xlu1 %713 }
 0x2ed   : > { %2842 = vpow2.f32 %v739_v51  ;;  %v730_v56 = vsub.f32 %v697_v13, %v714_v54  ;;  %v708_v57 = vpop.xlane.xlu0 %707 }
 0x2ee   : > { %v728_v58 = vsub.f32 %v695_v17, %v708_v57  ;;  %2844 = vpow2.f32 %v735_v52 }
 0x2ef   : > { %v741_v59 = vmul.f32 1.442695, %v730_v56 }
 0x2f0   : > { %v737_v60 = vmul.f32 1.442695, %v728_v58 }
 0x2f1   : > { %2846 = vpow2.f32 %v741_v59  ;;  %v717_v61 = vpop.xlane.xlu0 %716 }
 0x2f2   : > { %2848 = vpow2.f32 %v737_v60  ;;  %v731_v62 = vsub.f32 %v698_v25, %v717_v61  ;;  %v541_v25 = vpop.f32.mrb[5].mxu1 }
 0x2f3   : > { %v2506_v26 = vpop.f32.mrb[6].mxu1  ;;  %v720_v31 = vpop.xlane.xlu1 %719 }
 0x2f4   : > { %v743_v7 = vmul.f32 1.442695, %v731_v62  ;;  %v544_v27 = vpop.f32.mrb[7].mxu1  ;;  %v732_v37 = vsub.f32 %v3484_v30, %v720_v31 }
 0x2f5   : > { %v723_v63 = vpop.xlane.xlu0 %722  ;;  %v3522_v28 = vpack.c.bf16 %v544_v27, %v541_v25 }
 0x2f6   : > { %v733_v0 = vsub.f32 %v700_v29, %v723_v63  ;;  %v3528_v29 = vpack.c.bf16 %v2506_v26, %v2505_v24  ;;  %v745_v40 = vmul.f32 1.442695, %v732_v37 }
 0x2f7   : > { %v3504_v1 = vpop.eup %2842  ;;  %2527 = vmatprep.subr.bf16.mxu1 %v3522_v28  ;;  %v726_v35 = vpop.xlane.xlu1 %725 }
 0x2f8   : > { %v747_v8 = vmul.f32 1.442695, %v733_v0  ;;  %v757_v9 = vsel %vm702_vm3, %v3504_v1, 0.0  ;;  %v3508_v10 = vpop.eup %2844  ;;  %2528 = vmatpush3.bf16.msra.mxu1 %v3522_v28  ;;  %v734_v36 = vsub.f32 %v3491_v33, %v726_v35 }
 0x2f9   : > { %758 = vadd.xlane.f32.xlu0 %v757_v9  ;;  %v751_v12 = vsel %vm702_vm3, %v3508_v10, 0.0  ;;  %2529 = vmatprep.subr.bf16.mxu1 %v3528_v29 }
 0x2fa   : > { %2850 = vpow2.f32 %v747_v8  ;;  %v749_v38 = vmul.f32 1.442695, %v734_v36 }
 0x2fb   : > { %v2847_v11 = vpop.eup %2846  ;;  %2852 = vpow2.f32 %v743_v7 }
 0x2fc   : > { %v760_v13 = vsel %vm702_vm3, %v2847_v11, 0.0  ;;  %v2849_v14 = vpop.eup %2848  ;;  %2530 = vmatpush3.bf16.msra.mxu1 %v3528_v29  ;;  %2854 = vpow2.f32 %v749_v38 }
 0x2fd   : > { %752 = vadd.xlane.f32.xlu0 %v751_v12  ;;  %761 = vadd.xlane.f32.xlu1 %v760_v13  ;;  %v754_v15 = vsel %vm702_vm3, %v2849_v14, 0.0  ;;  %2856 = vpow2.f32 %v745_v40 }
 0x301   : > { %755 = vadd.xlane.f32.xlu1 %v754_v15 }
 0x304   : > { %v3514_v17 = vpop.eup %2850 }
 0x305   : > { %v769_v20 = vsel %vm702_vm3, %v3514_v17, 0.0  ;;  %v3518_v21 = vpop.eup %2852 }
 0x306   : > { %770 = vadd.xlane.f32.xlu0 %v769_v20  ;;  %v763_v23 = vsel %vm702_vm3, %v3518_v21, 0.0  ;;  %v2855_v43 = vpop.eup %2854 }
 0x307   : > { %v772_v45 = vsel %vm702_vm3, %v2855_v43, 0.0  ;;  %v2857_v47 = vpop.eup %2856 }
 0x308   : > { %v766_v49 = vsel %vm702_vm3, %v2857_v47, 0.0 }
 0x30a   : > { %764 = vadd.xlane.f32.xlu0 %v763_v23 }
 0x312   : > { %894 = vrot.lane.b32.xlu1 %v3386_v41, %s3138_s21 }
 0x316   : > { %896 = vrot.lane.b32.xlu1 %v3394_v48, %s3138_s21 }
 0x320   : > { %892 = vrot.lane.b32.xlu0 %v3376_v34, %s3138_s21 }
 0x324   : > { %880 = vrot.lane.b32.xlu0 %v3374_v32, %s3138_s21 }
 0x328   : > { %884 = vrot.lane.b32.xlu0 %v3392_v46, %s3138_s21 }
 0x33a   : > { %773 = vadd.xlane.f32.xlu1 %v772_v45 }
 0x33e   : > { %767 = vadd.xlane.f32.xlu1 %v766_v49 }
 0x34f   : > { %898 = vrot.lane.b32.xlu1 %v3402_v55, %s3138_s21 }
 0x353   : > { %882 = vrot.lane.b32.xlu1 %v3384_v39, %s3138_s21 }
 0x357   : > { %886 = vrot.lane.b32.xlu1 %v3400_v53, %s3138_s21 }
 0x386   : > { %v759_v30 = vpop.xlane.xlu0 %758 }
 0x38a   : > { %v753_v33 = vpop.xlane.xlu0 %752  ;;  %v762_v50 = vpop.xlane.xlu1 %761 }
 0x38b   : > { %2858 = vrcp.f32 %v762_v50 }
 0x38c   : > { %2860 = vrcp.f32 %v753_v33 }
 0x38d   : > { %2862 = vrcp.f32 %v759_v30 }
 0x38e   : > { %v756_v51 = vpop.xlane.xlu1 %755 }
 0x38f   : > { %2864 = vrcp.f32 %v756_v51 }
 0x392   : > { %v895_v12 = vpop.permute.xlu1 %894 }
 0x393   : > { %v771_v52 = vpop.xlane.xlu0 %770 }
 0x395   : > { %v2859_v54 = vpop.eup %2858 }
 0x396   : > { %v2861_v56 = vpop.eup %2860  ;;  %v786_v60 = vmul.f32 %v2859_v54, %v2847_v11  ;;  %v897_v11 = vpop.permute.xlu1 %896 }
 0x397   : > { %v765_v57 = vpop.xlane.xlu0 %764  ;;  %v2863_v58 = vpop.eup %2862  ;;  %v783_v61 = vmul.f32 %v2861_v56, %v3508_v10  ;;  %v916_v10 = vsel %vm604_vm0, %v895_v12, 0 }
 0x398   : > { %v785_v63 = vmul.f32 %v2863_v58, %v3504_v1  ;;  %v919_v1 = vsel %vm604_vm0, %v897_v11, 0 }
 0x399   : > { %v2865_v59 = vpop.eup %2864 }
 0x39a   : > { %v784_v62 = vmul.f32 %v2865_v59, %v2849_v14  ;;  %v792_v8 = vpack.c.bf16 %v786_v60, %v785_v63 }
 0x39b   : > { %v893_v0 = vpop.permute.xlu0 %892 }
 0x39c   : > { %2711 = vmatprep.subr.msk.bf16.mxu1 %vm604_vm0, %v893_v0  ;;  %v791_v7 = vpack.c.bf16 %v784_v62, %v783_v61  ;;  %v913_v9 = vsel %vm604_vm0, %v893_v0, 0 }
 0x39e   : > { %2531 = vmatprep.mubr.msk.bf16.mxu1 %vm702_vm3, %v791_v7 }
 0x39f   : > { %2532 = vmatmul.mubr.msk.bf16.vlgmr.msra.gmra.mrb[8].mxu1 %vm702_vm3, %v792_v8  ;;  %v881_v40 = vpop.permute.xlu0 %880 }
 0x3a0   : > { %2540 = vmatpush3.bf16.xpose.msra.mxu1 %v913_v9 }
 0x3a1   : > { %2712 = vmatprep.subr.msk.bf16.mxu1 %vm604_vm0, %v895_v12 }
 0x3a3   : > { %v885_v49 = vpop.permute.xlu0 %884 }
 0x3a8   : > { %2542 = vmatpush3.bf16.xpose.msra.mxu1 %v916_v10 }
 0x3a9   : > { %2713 = vmatprep.subr.msk.bf16.mxu1 %vm604_vm0, %v897_v11 }
 0x3b0   : > { %2544 = vmatpush3.bf16.xpose.msra.mxu1 %v919_v1 }
 0x3c7   : > { %v774_v13 = vpop.xlane.xlu1 %773 }
 0x3c8   : > { %2866 = vrcp.f32 %v774_v13 }
 0x3c9   : > { %2868 = vrcp.f32 %v765_v57 }
 0x3ca   : > { %2870 = vrcp.f32 %v771_v52 }
 0x3cb   : > { %v768_v14 = vpop.xlane.xlu1 %767 }
 0x3cc   : > { %2872 = vrcp.f32 %v768_v14 }
 0x3cf   : > { %v899_v15 = vpop.permute.xlu1 %898 }
 0x3d0   : > { %v922_v20 = vsel %vm604_vm0, %v899_v15, 0  ;;  %2714 = vmatprep.subr.msk.bf16.mxu1 %vm604_vm0, %v899_v15 }
 0x3d1   : > { %2546 = vmatpush3.bf16.xpose.msra.mxu1 %v922_v20 }
 0x3d2   : > { %v2867_v23 = vpop.eup %2866 }
 0x3d3   : > { %v2869_v24 = vpop.eup %2868  ;;  %v790_v27 = vmul.f32 %v2867_v23, %v2855_v43  ;;  %v883_v45 = vpop.permute.xlu1 %882 }
 0x3d4   : > { %v2871_v25 = vpop.eup %2870  ;;  %v787_v31 = vmul.f32 %v2869_v24, %v3518_v21 }
 0x3d5   : > { %v789_v36 = vmul.f32 %v2871_v25, %v3514_v17 }
 0x3d6   : > { %v2873_v26 = vpop.eup %2872 }
 0x3d7   : > { %v788_v35 = vmul.f32 %v2873_v26, %v2857_v47  ;;  %v794_v38 = vpack.c.bf16 %v790_v27, %v789_v36  ;;  %v887_v43 = vpop.permute.xlu1 %886 }
 0x3d9   : > { %v793_v37 = vpack.c.bf16 %v788_v35, %v787_v31 }
 0x3db   : > { %2535 = vmatprep.mubr.msk.bf16.mxu1 %vm702_vm3, %v793_v37 }
 0x3dc   : > { %2536 = vmatmul.mubr.msk.bf16.gmra.mrb[12].mxu1 %vm702_vm3, %v794_v38 }
 0x3dd   : > { %2547 = vmatprep.mubr.msk.bf16.mxu1 %vm604_vm0, %v881_v40 }
 0x3e4   : > { %2548 = vmatmul.mubr.msk.bf16.vlgmr.msra.gmra.mrb[16].mxu1 %vm604_vm0, %v883_v45 }
 0x3e5   : > { %2551 = vmatprep.mubr.msk.bf16.mxu1 %vm604_vm0, %v885_v49 }
 0x3ec   : > { %2552 = vmatmul.mubr.msk.bf16.gmra.mrb[20].mxu1 %vm604_vm0, %v887_v43 }
 0x472   : > { %v3570_v21 = vpop.f32.mrb[8].mxu1 }
 0x473   : > { %v3572_v17 = vpop.f32.mrb[9].mxu1 }
 0x474   : > { %v3574_v47 = vpop.f32.mrb[10].mxu1 }
 0x475   : > { %v873_v30 = vpack.c.bf16 %v3574_v47, %v3570_v21  ;;  %v3578_v33 = vpop.f32.mrb[11].mxu1 }
 0x476   : > { %v872_v50 = vpack.c.bf16 %v3578_v33, %v3572_v17 }
 0x4af   : > { %v3582_v51 = vpop.f32.mrb[12].mxu1 }
 0x4b0   : > { %v3584_v52 = vpop.f32.mrb[13].mxu1 }
 0x4b1   : > { %v3586_v54 = vpop.f32.mrb[14].mxu1 }
 0x4b2   : > { %v875_v56 = vpack.c.bf16 %v3586_v54, %v3582_v51  ;;  %v3590_v57 = vpop.f32.mrb[15].mxu1 }
 0x4b3   : > { %v874_v58 = vpack.c.bf16 %v3590_v57, %v3584_v52 }
 0x4b7   : > { %v2549_v59 = vpop.f32.mrb[16].mxu1 }
 0x4b8   : > { %v991_v60 = vsel %vm598_vm1, %v2549_v59, -1e+30  ;;  %v958_v61 = vpop.f32.mrb[17].mxu1 }
 0x4b9   : > { %v2550_v62 = vpop.f32.mrb[18].mxu1  ;;  %v1003_v63 = vsel %vm702_vm3, %v991_v60, -inf  ;;  %v989_v0 = vsel %vm596_vm2, %v958_v61, -1e+30 }
 0x4ba   : > { %1004 = vmax.xlane.f32.xlu0 %v1003_v63  ;;  %v961_v7 = vpop.f32.mrb[19].mxu1  ;;  %v997_v12 = vsel %vm702_vm3, %v989_v0, -inf  ;;  %v992_v10 = vsel %vm599_vm4, %v2550_v62, -1e+30 }
 0x4bb   : > { %v990_v8 = vsel %vm597_vm5, %v961_v7, -1e+30  ;;  %v1006_v14 = vsel %vm702_vm3, %v992_v10, -inf }
 0x4bc   : > { %v1000_v9 = vsel %vm702_vm3, %v990_v8, -inf }
 0x4bd   : > { %1001 = vmax.xlane.f32.xlu1 %v1000_v9 }
 0x4be   : > { %998 = vmax.xlane.f32.xlu0 %v997_v12 }
 0x4bf   : > { %v2553_v11 = vpop.f32.mrb[20].mxu1 }
 0x4c0   : > { %v974_v1 = vpop.f32.mrb[21].mxu1  ;;  %v995_v15 = vsel %vm602_vm7, %v2553_v11, -1e+30 }
 0x4c1   : > { %v2554_v13 = vpop.f32.mrb[22].mxu1  ;;  %v1015_v23 = vsel %vm702_vm3, %v995_v15, -inf  ;;  %v993_v24 = vsel %vm600_vm6, %v974_v1, -1e+30 }
 0x4c2   : > { %1007 = vmax.xlane.f32.xlu0 %v1006_v14  ;;  %v977_v20 = vpop.f32.mrb[23].mxu1  ;;  %v1009_v25 = vsel %vm702_vm3, %v993_v24, -inf  ;;  %v3627_v26 = vsel %vm603_vm9, %v2554_v13, -1e+30 }
 0x4c3   : > { %v1018_v27 = vsel %vm702_vm3, %v3627_v26, -inf  ;;  %v3634_v31 = vsel %vm601_vm8, %v977_v20, -1e+30 }
 0x4c4   : > { %v1012_v35 = vsel %vm702_vm3, %v3634_v31, -inf }
 0x4c6   : > { %1016 = vmax.xlane.f32.xlu0 %v1015_v23 }
 0x4ca   : > { %1010 = vmax.xlane.f32.xlu0 %v1009_v25 }
 0x4ce   : > { %1095 = vrot.lane.b32.xlu1 %v3496_v42, %s3138_s21 }
 0x4d2   : > { %1097 = vrot.lane.b32.xlu1 %v3522_v28, %s3138_s21 }
 0x4e0   : > { %1093 = vrot.lane.b32.xlu0 %v3498_v44, %s3138_s21 }
 0x4f6   : > { %1019 = vmax.xlane.f32.xlu1 %v1018_v27 }
 0x4fa   : > { %1013 = vmax.xlane.f32.xlu1 %v1012_v35 }
 0x50b   : > { %1099 = vrot.lane.b32.xlu1 %v3528_v29, %s3138_s21 }
 0x547   : > { %v1005_v36 = vpop.xlane.xlu0 %1004 }
 0x548   : > { %v1023_v37 = vsub.f32 %v991_v60, %v1005_v36 }
 0x54a   : > { %v1033_v38 = vmul.f32 1.442695, %v1023_v37  ;;  %v1002_v40 = vpop.xlane.xlu1 %1001 }
 0x54b   : > { %v999_v45 = vpop.xlane.xlu0 %998  ;;  %v1022_v43 = vsub.f32 %v990_v8, %v1002_v40 }
 0x54c   : > { %2874 = vpow2.f32 %v1033_v38  ;;  %v1021_v49 = vsub.f32 %v989_v0, %v999_v45 }
 0x54d   : > { %v1031_v63 = vmul.f32 1.442695, %v1022_v43 }
 0x54e   : > { %v1029_v59 = vmul.f32 1.442695, %v1021_v49 }
 0x54f   : > { %v1008_v61 = vpop.xlane.xlu0 %1007 }
 0x550   : > { %2876 = vpow2.f32 %v1029_v59  ;;  %v1024_v62 = vsub.f32 %v992_v10, %v1008_v61  ;;  %v1096_v10 = vpop.permute.xlu1 %1095 }
 0x552   : > { %v1035_v7 = vmul.f32 1.442695, %v1024_v62 }
 0x553   : > { %v1017_v9 = vpop.xlane.xlu0 %1016 }
 0x554   : > { %2878 = vpow2.f32 %v1035_v7  ;;  %v1027_v12 = vsub.f32 %v995_v15, %v1017_v9  ;;  %v1098_v27 = vpop.permute.xlu1 %1097 }
 0x555   : > { %2880 = vpow2.f32 %v1031_v63 }
 0x556   : > { %v3640_v11 = vpop.eup %2874  ;;  %v1041_v1 = vmul.f32 1.442695, %v1027_v12 }
 0x557   : > { %v1011_v60 = vpop.xlane.xlu0 %1010  ;;  %v1051_v13 = vsel %vm702_vm3, %v3640_v11, 0.0 }
 0x558   : > { %2882 = vpow2.f32 %v1041_v1  ;;  %v1025_v0 = vsub.f32 %v993_v24, %v1011_v60  ;;  %1052 = vadd.xlane.f32.xlu0 %v1051_v13  ;;  %v2834_v1 = vld [vmem:[#allocation7 + $0x10] sm:$0xff]  }
 0x559   : > { %2571 = vmatprep.subr.bf16.mxu0 %v2834_v1 }
 0x55a   : > { %v3644_v8 = vpop.eup %2876  ;;  %v1037_v14 = vmul.f32 1.442695, %v1025_v0  ;;  %2572 = vmatpush3.bf16.msra.mxu0 %v2834_v1 }
 0x55b   : > { %v1094_v20 = vpop.permute.xlu0 %1093  ;;  %v1045_v23 = vsel %vm702_vm3, %v3644_v8, 0.0 }
 0x55c   : > { %2884 = vpow2.f32 %v1037_v14  ;;  %1046 = vadd.xlane.f32.xlu0 %v1045_v23  ;;  %2555 = vmatprep.subr.bf16.mxu1 %v1094_v20 }
 0x55d   : > { %2556 = vmatpush3.bf16.msra.mxu1 %v1094_v20 }
 0x55e   : > { %v3648_v15 = vpop.eup %2878  ;;  %2557 = vmatprep.subr.bf16.mxu1 %v1096_v10 }
 0x55f   : > { %v1054_v25 = vsel %vm702_vm3, %v3648_v15, 0.0  ;;  %v3652_v24 = vpop.eup %2880 }
 0x560   : > { %1055 = vadd.xlane.f32.xlu1 %v1054_v25  ;;  %v1048_v37 = vsel %vm702_vm3, %v3652_v24, 0.0 }
 0x561   : > { %2558 = vmatpush3.bf16.msra.mxu1 %v1096_v10 }
 0x562   : > { %v3654_v35 = vpop.eup %2882  ;;  %2559 = vmatprep.subr.bf16.mxu1 %v1098_v27 }
 0x563   : > { %v1063_v36 = vsel %vm702_vm3, %v3654_v35, 0.0 }
 0x564   : > { %1064 = vadd.xlane.f32.xlu0 %v1063_v36  ;;  %1049 = vadd.xlane.f32.xlu1 %v1048_v37 }
 0x565   : > { %2560 = vmatpush3.bf16.msra.mxu1 %v1098_v27 }
 0x566   : > { %v3660_v38 = vpop.eup %2884 }
 0x567   : > { %v1057_v40 = vsel %vm702_vm3, %v3660_v38, 0.0 }
 0x568   : > { %1058 = vadd.xlane.f32.xlu0 %v1057_v40 }
 0x575   : > { %1374 = vrot.lane.b32.xlu1 %v3386_v41, %s3139_s23 }
 0x579   : > { %1376 = vrot.lane.b32.xlu1 %v3394_v48, %s3139_s23 }
 0x583   : > { %v1020_v45 = vpop.xlane.xlu1 %1019 }
 0x584   : > { %v1028_v49 = vsub.f32 %v3627_v26, %v1020_v45 }
 0x586   : > { %v1043_v43 = vmul.f32 1.442695, %v1028_v49 }
 0x587   : > { %v1014_v59 = vpop.xlane.xlu1 %1013 }
 0x588   : > { %2886 = vpow2.f32 %v1043_v43  ;;  %v1026_v61 = vsub.f32 %v3634_v31, %v1014_v59 }
 0x58a   : > { %v1039_v62 = vmul.f32 1.442695, %v1026_v61 }
 0x58b   : > { %v1100_v63 = vpop.permute.xlu1 %1099 }
 0x58c   : > { %2561 = vmatprep.subr.bf16.mxu1 %v1100_v63  ;;  %2888 = vpow2.f32 %v1039_v62 }
 0x58d   : > { %2562 = vmatpush3.bf16.msra.mxu1 %v1100_v63 }
 0x592   : > { %v3670_v7 = vpop.eup %2886 }
 0x593   : > { %v1066_v9 = vsel %vm702_vm3, %v3670_v7, 0.0 }
 0x594   : > { %1067 = vadd.xlane.f32.xlu0 %v1066_v9 }
 0x596   : > { %v3674_v12 = vpop.eup %2888 }
 0x597   : > { %v1060_v26 = vsel %vm702_vm3, %v3674_v12, 0.0 }
 0x59d   : > { %1061 = vadd.xlane.f32.xlu1 %v1060_v26 }
 0x5aa   : > { %1372 = vrot.lane.b32.xlu0 %v3376_v34, %s3139_s23 }
 0x5ae   : > { %1364 = vrot.lane.b32.xlu0 %v3374_v32, %s3139_s23  ;;  %1378 = vrot.lane.b32.xlu1 %v3402_v55, %s3139_s23 }
 0x5b2   : > { %1368 = vrot.lane.b32.xlu0 %v3392_v46, %s3139_s23  ;;  %1366 = vrot.lane.b32.xlu1 %v3384_v39, %s3139_s23 }
 0x5b6   : > { %1767 = vrot.lane.b32.xlu0 %v3376_v34, %s3140_s30  ;;  %1370 = vrot.lane.b32.xlu1 %v3400_v53, %s3139_s23 }
 0x5ba   : > { %1771 = vrot.lane.b32.xlu0 %v3394_v48, %s3140_s30  ;;  %1769 = vrot.lane.b32.xlu1 %v3386_v41, %s3140_s30 }
 0x5be   : > { %1759 = vrot.lane.b32.xlu0 %v3374_v32, %s3140_s30  ;;  %1773 = vrot.lane.b32.xlu1 %v3402_v55, %s3140_s30 }
 0x5c2   : > { %1763 = vrot.lane.b32.xlu0 %v3392_v46, %s3140_s30  ;;  %1761 = vrot.lane.b32.xlu1 %v3384_v39, %s3140_s30 }
 0x5c6   : > { %1765 = vrot.lane.b32.xlu1 %v3400_v53, %s3140_s30 }
 0x5e5   : > { %v1053_v34 = vpop.xlane.xlu0 %1052 }
 0x5e9   : > { %v1047_v31 = vpop.xlane.xlu0 %1046 }
 0x5ed   : > { %v1056_v48 = vpop.xlane.xlu1 %1055 }
 0x5ee   : > { %2890 = vrcp.f32 %v1056_v48 }
 0x5ef   : > { %2892 = vrcp.f32 %v1047_v31 }
 0x5f0   : > { %2894 = vrcp.f32 %v1053_v34 }
 0x5f1   : > { %v1050_v32 = vpop.xlane.xlu1 %1049  ;;  %v1065_v20 = vpop.xlane.xlu0 %1064 }
 0x5f2   : > { %2896 = vrcp.f32 %v1050_v32 }
 0x5f5   : > { %v1059_v23 = vpop.xlane.xlu0 %1058  ;;  %v1375_v25 = vpop.permute.xlu1 %1374 }
 0x5f8   : > { %v2891_v41 = vpop.eup %2890 }
 0x5f9   : > { %v2893_v55 = vpop.eup %2892  ;;  %v1080_v39 = vmul.f32 %v2891_v41, %v3648_v15  ;;  %v1377_v37 = vpop.permute.xlu1 %1376 }
 0x5fa   : > { %v2895_v46 = vpop.eup %2894  ;;  %v1077_v13 = vmul.f32 %v2893_v55, %v3644_v8  ;;  %v1396_v8 = vsel %vm604_vm0, %v1375_v25, 0  ;;  %v1399_v62 = vsel %vm604_vm0, %v1377_v37, 0 }
 0x5fb   : > { %v1079_v0 = vmul.f32 %v2895_v46, %v3640_v11 }
 0x5fc   : > { %v2897_v60 = vpop.eup %2896 }
 0x5fd   : > { %v1078_v53 = vmul.f32 %v2897_v60, %v3652_v24  ;;  %v1086_v10 = vpack.c.bf16 %v1080_v39, %v1079_v0 }
 0x5ff   : > { %v1085_v14 = vpack.c.bf16 %v1078_v53, %v1077_v13  ;;  %v2835_v13 = vld [vmem:[#allocation7 + $0x18] sm:$0xff]  }
 0x600   : > { %2573 = vmatprep.subr.bf16.mxu0 %v2835_v13 }
 0x601   : > { %2563 = vmatprep.mubr.msk.bf16.mxu1 %vm702_vm3, %v1085_v14  ;;  %2574 = vmatpush3.bf16.msra.mxu0 %v2835_v13 }
 0x602   : > { %2564 = vmatmul.mubr.msk.bf16.vlgmr.msra.gmra.mrb[24].mxu1 %vm702_vm3, %v1086_v10 }
 0x621   : > { %v1068_v27 = vpop.xlane.xlu0 %1067 }
 0x622   : > { %2898 = vrcp.f32 %v1068_v27 }
 0x623   : > { %2900 = vrcp.f32 %v1059_v23 }
 0x624   : > { %2902 = vrcp.f32 %v1065_v20  ;;  %v2836_v20 = vld [vmem:[#allocation7] sm:$0xff]  }
 0x625   : > { %v1373_v36 = vpop.permute.xlu0 %1372  ;;  %2583 = vmatprep.subr.bf16.mxu0 %v2836_v20 }
 0x626   : > { %v1393_v15 = vsel %vm604_vm0, %v1373_v36, 0  ;;  %2715 = vmatprep.subr.msk.bf16.mxu1 %vm604_vm0, %v1373_v36 }
 0x627   : > { %2596 = vmatpush3.bf16.xpose.msra.mxu1 %v1393_v15 }
 0x628   : > { %2716 = vmatprep.subr.msk.bf16.mxu1 %vm604_vm0, %v1375_v25 }
 0x629   : > { %v1365_v45 = vpop.permute.xlu0 %1364 }
 0x62a   : > { %v1062_v11 = vpop.xlane.xlu1 %1061 }
 0x62b   : > { %2904 = vrcp.f32 %v1062_v11  ;;  %v2837_v11 = vld [vmem:[#allocation7 + $0x8] sm:$0xff]  }
 0x62c   : > { %v2899_v24 = vpop.eup %2898 }
 0x62d   : > { %v2901_v40 = vpop.eup %2900  ;;  %v1084_v61 = vmul.f32 %v2899_v24, %v3670_v7  ;;  %v1369_v48 = vpop.permute.xlu0 %1368 }
 0x62e   : > { %v2903_v49 = vpop.eup %2902  ;;  %v1379_v59 = vpop.permute.xlu1 %1378  ;;  %v1081_v63 = vmul.f32 %v2901_v40, %v3660_v38 }
 0x62f   : > { %2598 = vmatpush3.bf16.xpose.msra.mxu1 %v1396_v8  ;;  %v1083_v26 = vmul.f32 %v2903_v49, %v3654_v35  ;;  %v1402_v7 = vsel %vm604_vm0, %v1379_v59, 0 }
 0x630   : > { %2717 = vmatprep.subr.msk.bf16.mxu1 %vm604_vm0, %v1377_v37 }
 0x631   : > { %v1088_v31 = vpack.c.bf16 %v1084_v61, %v1083_v26  ;;  %v1768_v38 = vpop.permute.xlu0 %1767 }
 0x632   : > { %v1367_v1 = vpop.permute.xlu1 %1366  ;;  %v1788_v35 = vsel %vm604_vm0, %v1768_v38, 0 }
 0x635   : > { %v2905_v43 = vpop.eup %2904  ;;  %v1772_v41 = vpop.permute.xlu0 %1771 }
 0x636   : > { %v1082_v9 = vmul.f32 %v2905_v43, %v3674_v12  ;;  %v1371_v12 = vpop.permute.xlu1 %1370  ;;  %v1794_v60 = vsel %vm604_vm0, %v1772_v41, 0 }
 0x637   : > { %2600 = vmatpush3.bf16.xpose.msra.mxu1 %v1399_v62 }
 0x638   : > { %2718 = vmatprep.subr.msk.bf16.mxu1 %vm604_vm0, %v1379_v59  ;;  %v1087_v34 = vpack.c.bf16 %v1082_v9, %v1081_v63 }
 0x639   : > { %v1760_v55 = vpop.permute.xlu0 %1759 }
 0x63a   : > { %2567 = vmatprep.mubr.msk.bf16.mxu1 %vm702_vm3, %v1087_v34  ;;  %v1770_v32 = vpop.permute.xlu1 %1769 }
 0x63b   : > { %2568 = vmatmul.mubr.msk.bf16.gmra.mrb[28].mxu1 %vm702_vm3, %v1088_v31  ;;  %v1791_v46 = vsel %vm604_vm0, %v1770_v32, 0 }
 0x63c   : > { %2603 = vmatprep.mubr.msk.bf16.mxu1 %vm604_vm0, %v1365_v45 }
 0x63d   : > { %v1764_v14 = vpop.permute.xlu0 %1763 }
 0x63e   : > { %v1774_v39 = vpop.permute.xlu1 %1773 }
 0x63f   : > { %2602 = vmatpush3.bf16.xpose.msra.mxu1 %v1402_v7  ;;  %v1797_v53 = vsel %vm604_vm0, %v1774_v39, 0 }
 0x640   : > { %2719 = vmatprep.subr.msk.bf16.mxu1 %vm604_vm0, %v1768_v38 }
 0x642   : > { %v1762_v0 = vpop.permute.xlu1 %1761 }
 0x646   : > { %2604 = vmatmul.mubr.msk.bf16.vlgmr.msra.gmra.mrb[32].mxu1 %vm604_vm0, %v1367_v1  ;;  %v1766_v10 = vpop.permute.xlu1 %1765 }
 0x647   : > { %2607 = vmatprep.mubr.msk.bf16.mxu1 %vm604_vm0, %v1369_v48  ;;  %2640 = vmatpush3.bf16.xpose.msra.mxu1 %v1788_v35 }
 0x648   : > { %2720 = vmatprep.subr.msk.bf16.mxu1 %vm604_vm0, %v1770_v32 }
 0x64e   : > { %2608 = vmatmul.mubr.msk.bf16.gmra.mrb[36].mxu1 %vm604_vm0, %v1371_v12 }
 0x64f   : > { %2642 = vmatpush3.bf16.xpose.msra.mxu1 %v1791_v46  ;;  %2647 = vmatprep.mubr.msk.bf16.mxu1 %vm604_vm0, %v1760_v55 }
 0x650   : > { %2721 = vmatprep.subr.msk.bf16.mxu1 %vm604_vm0, %v1772_v41 }
 0x657   : > { %2644 = vmatpush3.bf16.xpose.msra.mxu1 %v1794_v60 }
 0x658   : > { %2722 = vmatprep.subr.msk.bf16.mxu1 %vm604_vm0, %v1774_v39 }
 0x65f   : > { %2646 = vmatpush3.bf16.xpose.msra.mxu1 %v1797_v53 }
 0x666   : > { %2648 = vmatmul.mubr.msk.bf16.vlgmr.msra.gmra.mrb[40].mxu1 %vm604_vm0, %v1762_v0 }
 0x667   : > { %2651 = vmatprep.mubr.msk.bf16.mxu1 %vm604_vm0, %v1764_v14 }
 0x66e   : > { %2652 = vmatmul.mubr.msk.bf16.gmra.mrb[44].mxu1 %vm604_vm0, %v1766_v10 }
 0x6d5   : > { %v2565_v23 = vpop.f32.mrb[24].mxu1 }
 0x6d6   : > { %v1151_v25 = vpop.f32.mrb[25].mxu1 }
 0x6d7   : > { %v2566_v27 = vpop.f32.mrb[26].mxu1 }
 0x6d8   : > { %v1183_v36 = vpack.c.bf16 %v2566_v27, %v2565_v23  ;;  %v1154_v37 = vpop.f32.mrb[27].mxu1 }
 0x6d9   : > { %v1182_v15 = vpack.c.bf16 %v1154_v37, %v1151_v25 }
 0x6db   : > { %2575 = vmatprep.mubr.msk.bf16.mxu0 %vm604_vm0, %v1182_v15 }
 0x6dc   : > { %2576 = vmatmul.mubr.msk.bf16.vlgmr.msra.gmra.mrb[24].mxu0 %vm604_vm0, %v1183_v36 }
 0x6dd   : > { %2584 = vmatpush3.bf16.msra.mxu0 %v2836_v20 }
 0x6de   : > { %2585 = vmatprep.subr.bf16.mxu0 %v2837_v11 }
 0x6e1   : > { %2586 = vmatpush3.bf16.msra.mxu0 %v2837_v11 }
 0x70e   : > { %v2569_v8 = vpop.f32.mrb[28].mxu1 }
 0x70f   : > { %v1167_v24 = vpop.f32.mrb[29].mxu1 }
 0x710   : > { %v2570_v40 = vpop.f32.mrb[30].mxu1 }
 0x711   : > { %v1185_v45 = vpack.c.bf16 %v2570_v40, %v2569_v8  ;;  %v1170_v49 = vpop.f32.mrb[31].mxu1 }
 0x712   : > { %v1184_v43 = vpack.c.bf16 %v1170_v49, %v1167_v24 }
 0x714   : > { %2579 = vmatprep.mubr.msk.bf16.mxu0 %vm604_vm0, %v1184_v43 }
 0x715   : > { %2580 = vmatmul.mubr.msk.bf16.gmra.mrb[28].mxu0 %vm604_vm0, %v1185_v45 }
 0x716   : > { %2587 = vmatprep.mubr.msk.bf16.mxu0 %vm604_vm0, %v872_v50 }
 0x719   : > { %v2605_v59 = vpop.f32.mrb[32].mxu1 }
 0x71a   : > { %v1438_v61 = vpop.f32.mrb[33].mxu1  ;;  %v1471_v34 = vsel %vm598_vm1, %v2605_v59, -1e+30 }
 0x71b   : > { %v1469_v62 = vsel %vm596_vm2, %v1438_v61, -1e+30  ;;  %v2606_v63 = vpop.f32.mrb[34].mxu1  ;;  %v1483_v50 = vsel %vm702_vm3, %v1471_v34, -inf }
 0x71c   : > { %v1441_v9 = vpop.f32.mrb[35].mxu1  ;;  %v1477_v26 = vsel %vm702_vm3, %v1469_v62, -inf  ;;  %v1472_v48 = vsel %vm599_vm4, %v2606_v63, -1e+30 }
 0x71d   : > { %v1470_v17 = vsel %vm597_vm5, %v1441_v9, -1e+30  ;;  %2588 = vmatmul.mubr.msk.bf16.vlgmr.msra.gmra.mrb[24].mxu0 %vm604_vm0, %v873_v30  ;;  %1478 = vmax.xlane.f32.xlu0 %v1477_v26  ;;  %v1486_v1 = vsel %vm702_vm3, %v1472_v48, -inf }
 0x71e   : > { %2591 = vmatprep.mubr.msk.bf16.mxu0 %vm604_vm0, %v874_v58  ;;  %v1480_v33 = vsel %vm702_vm3, %v1470_v17, -inf }
 0x71f   : > { %1481 = vmax.xlane.f32.xlu1 %v1480_v33 }
 0x721   : > { %1484 = vmax.xlane.f32.xlu0 %v1483_v50  ;;  %v2609_v31 = vpop.f32.mrb[36].mxu1 }
 0x722   : > { %v1454_v21 = vpop.f32.mrb[37].mxu1  ;;  %v1475_v12 = vsel %vm602_vm7, %v2609_v31, -1e+30 }
 0x723   : > { %v2610_v47 = vpop.f32.mrb[38].mxu1  ;;  %v1473_v52 = vsel %vm600_vm6, %v1454_v21, -1e+30  ;;  %v1495_v54 = vsel %vm702_vm3, %v1475_v12, -inf }
 0x724   : > { %v1457_v30 = vpop.f32.mrb[39].mxu1  ;;  %v3791_v7 = vsel %vm603_vm9, %v2610_v47, -1e+30  ;;  %v1489_v38 = vsel %vm702_vm3, %v1473_v52, -inf }
 0x725   : > { %v3780_v57 = vsel %vm601_vm8, %v1457_v30, -1e+30  ;;  %2592 = vmatmul.mubr.msk.bf16.gmra.mrb[28].mxu0 %vm604_vm0, %v875_v56  ;;  %1487 = vmax.xlane.f32.xlu0 %v1486_v1  ;;  %v1498_v51 = vsel %vm702_vm3, %v3791_v7, -inf }
 0x726   : > { %v1492_v58 = vsel %vm702_vm3, %v3780_v57, -inf }
 0x727   : > { %1493 = vmax.xlane.f32.xlu1 %v1492_v58 }
 0x729   : > { %1490 = vmax.xlane.f32.xlu0 %v1489_v38 }
 0x72b   : > { %1499 = vmax.xlane.f32.xlu1 %v1498_v51 }
 0x72d   : > { %1496 = vmax.xlane.f32.xlu0 %v1495_v54 }
 0x739   : > { %v3800_v56 = vpop.f32.mrb[40].mxu1 }
 0x73a   : > { %v3802_v35 = vpop.f32.mrb[41].mxu1  ;;  %v3868_v54 = vsel %vm598_vm1, %v3800_v56, -1e+30 }
 0x73b   : > { %v3804_v32 = vpop.f32.mrb[42].mxu1  ;;  %v3858_v51 = vsel %vm596_vm2, %v3802_v35, -1e+30  ;;  %v1878_v2 = vsel %vm702_vm3, %v3868_v54, -inf }
 0x73c   : > { %v3806_v41 = vpop.f32.mrb[43].mxu1  ;;  %v3876_v35 = vsel %vm599_vm4, %v3804_v32, -1e+30 }
 0x73d   : > { %v3902_v16 = vsel %vm597_vm5, %v3806_v41, -1e+30 }
 0x741   : > { %v3808_v55 = vpop.f32.mrb[44].mxu1 }
 0x742   : > { %v3810_v46 = vpop.f32.mrb[45].mxu1  ;;  %v3892_v5 = vsel %vm602_vm7, %v3808_v55, -1e+30 }
 0x743   : > { %v3812_v60 = vpop.f32.mrb[46].mxu1  ;;  %v3884_v3 = vsel %vm600_vm6, %v3810_v46, -1e+30  ;;  %v1890_v32 = vsel %vm702_vm3, %v3892_v5, -inf  ;;  %v1875_v46 = vsel %vm702_vm3, %v3902_v16, -inf }
 0x744   : > { %v3814_v39 = vpop.f32.mrb[47].mxu1  ;;  %v1884_v56 = vsel %vm702_vm3, %v3884_v3, -inf  ;;  %v3918_v6 = vsel %vm603_vm9, %v3812_v60, -1e+30 }
 0x745   : > { %v3910_v18 = vsel %vm601_vm8, %v3814_v39, -1e+30  ;;  %v1893_v41 = vsel %vm702_vm3, %v3918_v6, -inf }
 0x746   : > { %v1887_v55 = vsel %vm702_vm3, %v3910_v18, -inf }
 0x7aa   : > { %v1479_v13 = vpop.xlane.xlu0 %1478 }
 0x7ab   : > { %v1501_v53 = vsub.f32 %v1469_v62, %v1479_v13  ;;  %v1881_v13 = vsel %vm702_vm3, %v3876_v35, -inf }
 0x7ac   : > { %v1482_v0 = vpop.xlane.xlu1 %1481 }
 0x7ad   : > { %v1509_v20 = vmul.f32 1.442695, %v1501_v53  ;;  %v1502_v23 = vsub.f32 %v1470_v17, %v1482_v0 }
 0x7ae   : > { %v1485_v14 = vpop.xlane.xlu0 %1484 }
 0x7af   : > { %v1503_v10 = vsub.f32 %v1471_v34, %v1485_v14  ;;  %v1511_v37 = vmul.f32 1.442695, %v1502_v23 }
 0x7b1   : > { %v1513_v25 = vmul.f32 1.442695, %v1503_v10 }
 0x7b2   : > { %v1488_v27 = vpop.xlane.xlu0 %1487 }
 0x7b3   : > { %2906 = vpow2.f32 %v1513_v25  ;;  %v1504_v36 = vsub.f32 %v1472_v48, %v1488_v27 }
 0x7b4   : > { %2908 = vpow2.f32 %v1509_v20  ;;  %v1494_v31 = vpop.xlane.xlu1 %1493 }
 0x7b5   : > { %v1515_v15 = vmul.f32 1.442695, %v1504_v36  ;;  %v1506_v30 = vsub.f32 %v3780_v57, %v1494_v31  ;;  %v1872_v57 = vsel %vm702_vm3, %v3858_v51, -inf }
 0x7b6   : > { %v1491_v11 = vpop.xlane.xlu0 %1490 }
 0x7b7   : > { %2910 = vpow2.f32 %v1515_v15  ;;  %v1505_v8 = vsub.f32 %v1473_v52, %v1491_v11  ;;  %v1519_v52 = vmul.f32 1.442695, %v1506_v30 }
 0x7b8   : > { %2912 = vpow2.f32 %v1511_v37  ;;  %v1500_v21 = vpop.xlane.xlu1 %1499 }
 0x7b9   : > { %v1517_v49 = vmul.f32 1.442695, %v1505_v8  ;;  %v1508_v47 = vsub.f32 %v3791_v7, %v1500_v21 }
 0x7ba   : > { %v1497_v24 = vpop.xlane.xlu0 %1496 }
 0x7bb   : > { %v1507_v40 = vsub.f32 %v1475_v12, %v1497_v24  ;;  %v1523_v1 = vmul.f32 1.442695, %v1508_v47 }
 0x7bd   : > { %v3816_v45 = vpop.eup %2906  ;;  %v1521_v43 = vmul.f32 1.442695, %v1507_v40 }
 0x7be   : > { %v1531_v59 = vsel %vm702_vm3, %v3816_v45, 0.0  ;;  %v3820_v61 = vpop.eup %2908 }
 0x7bf   : > { %2914 = vpow2.f32 %v1521_v43  ;;  %1532 = vadd.xlane.f32.xlu0 %v1531_v59  ;;  %v1525_v63 = vsel %vm702_vm3, %v3820_v61, 0.0 }
 0x7c0   : > { %2916 = vpow2.f32 %v1517_v49 }
 0x7c1   : > { %v3822_v62 = vpop.eup %2910  ;;  %2918 = vpow2.f32 %v1523_v1 }
 0x7c2   : > { %v1534_v9 = vsel %vm702_vm3, %v3822_v62, 0.0  ;;  %v3828_v26 = vpop.eup %2912  ;;  %2920 = vpow2.f32 %v1519_v52 }
 0x7c3   : > { %1526 = vadd.xlane.f32.xlu0 %v1525_v63  ;;  %1535 = vadd.xlane.f32.xlu1 %v1534_v9  ;;  %v1528_v34 = vsel %vm702_vm3, %v3828_v26, 0.0 }
 0x7c7   : > { %1529 = vadd.xlane.f32.xlu1 %v1528_v34 }
 0x7c9   : > { %v3832_v17 = vpop.eup %2914 }
 0x7ca   : > { %v1543_v33 = vsel %vm702_vm3, %v3832_v17, 0.0  ;;  %v3836_v50 = vpop.eup %2916 }
 0x7cb   : > { %1544 = vadd.xlane.f32.xlu0 %v1543_v33  ;;  %v1537_v48 = vsel %vm702_vm3, %v3836_v50, 0.0  ;;  %v3848_v58 = vpop.eup %2918 }
 0x7cc   : > { %v1546_v38 = vsel %vm702_vm3, %v3848_v58, 0.0  ;;  %v3852_v12 = vpop.eup %2920 }
 0x7cd   : > { %v1540_v7 = vsel %vm702_vm3, %v3852_v12, 0.0 }
 0x7cf   : > { %1538 = vadd.xlane.f32.xlu0 %v1537_v48 }
 0x7d8   : > { %1571 = vrot.lane.b32.xlu1 %v3496_v42, %s3139_s23 }
 0x7dc   : > { %1573 = vrot.lane.b32.xlu1 %v3522_v28, %s3139_s23 }
 0x7e5   : > { %1569 = vrot.lane.b32.xlu0 %v3498_v44, %s3139_s23 }
 0x800   : > { %1547 = vadd.xlane.f32.xlu1 %v1546_v38 }
 0x804   : > { %1873 = vmax.xlane.f32.xlu0 %v1872_v57  ;;  %1541 = vadd.xlane.f32.xlu1 %v1540_v7 }
 0x808   : > { %1879 = vmax.xlane.f32.xlu0 %v1878_v2 }
 0x80c   : > { %1882 = vmax.xlane.f32.xlu0 %v1881_v13 }
 0x810   : > { %1885 = vmax.xlane.f32.xlu0 %v1884_v56 }
 0x814   : > { %1891 = vmax.xlane.f32.xlu0 %v1890_v32 }
 0x815   : > { %1575 = vrot.lane.b32.xlu1 %v3528_v29, %s3139_s23 }
 0x839   : > { %1876 = vmax.xlane.f32.xlu1 %v1875_v46 }
 0x83d   : > { %1888 = vmax.xlane.f32.xlu1 %v1887_v55 }
 0x841   : > { %1894 = vmax.xlane.f32.xlu1 %v1893_v41 }
 0x84c   : > { %v1533_v53 = vpop.xlane.xlu0 %1532 }
 0x850   : > { %v1527_v0 = vpop.xlane.xlu0 %1526  ;;  %v1536_v19 = vpop.xlane.xlu1 %1535 }
 0x851   : > { %2922 = vrcp.f32 %v1527_v0  ;;  %v2839_v0 = vld [vmem:[#allocation7 + $0x28] sm:$0xff]  }
 0x854   : > { %v1530_v39 = vpop.xlane.xlu1 %1529 }
 0x855   : > { %2924 = vrcp.f32 %v1530_v39 }
 0x856   : > { %2926 = vrcp.f32 %v1536_v19 }
 0x857   : > { %2928 = vrcp.f32 %v1533_v53  ;;  %v2838_v53 = vld [vmem:[#allocation7 + $0x20] sm:$0xff]  }
 0x858   : > { %v1545_v14 = vpop.xlane.xlu0 %1544  ;;  %v1572_v25 = vpop.permute.xlu1 %1571 }
 0x85b   : > { %v2923_v20 = vpop.eup %2922 }
 0x85c   : > { %v1539_v10 = vpop.xlane.xlu0 %1538  ;;  %v1557_v4 = vmul.f32 %v2923_v20, %v3820_v61  ;;  %v1574_v36 = vpop.permute.xlu1 %1573 }
 0x85f   : > { %v2925_v23 = vpop.eup %2924 }
 0x860   : > { %v1570_v27 = vpop.permute.xlu0 %1569  ;;  %v1558_v22 = vmul.f32 %v2925_v23, %v3828_v26  ;;  %v2927_v15 = vpop.eup %2926 }
 0x861   : > { %2611 = vmatprep.subr.bf16.mxu0 %v1570_v27  ;;  %v2929_v24 = vpop.eup %2928  ;;  %v1560_v40 = vmul.f32 %v2927_v15, %v3822_v62 }
 0x862   : > { %2612 = vmatpush3.bf16.msra.mxu0 %v1570_v27  ;;  %v1565_v60 = vpack.c.bf16 %v1558_v22, %v1557_v4  ;;  %v1559_v61 = vmul.f32 %v2929_v24, %v3816_v45 }
 0x863   : > { %2613 = vmatprep.subr.bf16.mxu0 %v1572_v25 }
 0x864   : > { %2619 = vmatprep.mubr.msk.bf16.mxu0 %vm702_vm3, %v1565_v60  ;;  %v1566_v9 = vpack.c.bf16 %v1560_v40, %v1559_v61 }
 0x866   : > { %2614 = vmatpush3.bf16.msra.mxu0 %v1572_v25 }
 0x867   : > { %2615 = vmatprep.subr.bf16.mxu0 %v1574_v36 }
 0x86a   : > { %2616 = vmatpush3.bf16.msra.mxu0 %v1574_v36 }
 0x88d   : > { %v1548_v37 = vpop.xlane.xlu1 %1547 }
 0x88e   : > { %2930 = vrcp.f32 %v1548_v37 }
 0x88f   : > { %2932 = vrcp.f32 %v1539_v10 }
 0x890   : > { %2934 = vrcp.f32 %v1545_v14 }
 0x891   : > { %v1874_v11 = vpop.xlane.xlu0 %1873  ;;  %v1542_v8 = vpop.xlane.xlu1 %1541 }
 0x892   : > { %2936 = vrcp.f32 %v1542_v8  ;;  %v1896_v49 = vsub.f32 %v3858_v51, %v1874_v11 }
 0x894   : > { %v1904_v26 = vmul.f32 1.442695, %v1896_v49 }
 0x895   : > { %v1880_v43 = vpop.xlane.xlu0 %1879  ;;  %v1576_v59 = vpop.permute.xlu1 %1575 }
 0x896   : > { %v1898_v63 = vsub.f32 %v3868_v54, %v1880_v43  ;;  %2617 = vmatprep.subr.bf16.mxu0 %v1576_v59 }
 0x897   : > { %2618 = vmatpush3.bf16.msra.mxu0 %v1576_v59 }
 0x898   : > { %v1908_v34 = vmul.f32 1.442695, %v1898_v63  ;;  %v2931_v33 = vpop.eup %2930  ;;  %2627 = vmatprep.subr.bf16.mxu0 %v2838_v53 }
 0x899   : > { %v1883_v48 = vpop.xlane.xlu0 %1882  ;;  %v2933_v31 = vpop.eup %2932  ;;  %v1564_v45 = vmul.f32 %v2931_v33, %v3848_v58 }
 0x89a   : > { %2938 = vpow2.f32 %v1908_v34  ;;  %v1899_v21 = vsub.f32 %v3876_v35, %v1883_v48  ;;  %2620 = vmatmul.mubr.msk.bf16.vlgmr.msra.gmra.mrb[32].mxu0 %vm702_vm3, %v1566_v9  ;;  %v2935_v62 = vpop.eup %2934  ;;  %v1561_v52 = vmul.f32 %v2933_v31, %v3836_v50 }
 0x89b   : > { %2940 = vpow2.f32 %v1904_v26  ;;  %v1563_v51 = vmul.f32 %v2935_v62, %v3832_v17  ;;  %2628 = vmatpush3.bf16.msra.mxu0 %v2838_v53 }
 0x89c   : > { %v2937_v47 = vpop.eup %2936  ;;  %v1910_v30 = vmul.f32 1.442695, %v1899_v21  ;;  %2629 = vmatprep.subr.bf16.mxu0 %v2839_v0 }
 0x89d   : > { %v1886_v1 = vpop.xlane.xlu0 %1885  ;;  %v1562_v38 = vmul.f32 %v2937_v47, %v3852_v12  ;;  %v1568_v54 = vpack.c.bf16 %v1564_v45, %v1563_v51 }
 0x89e   : > { %2942 = vpow2.f32 %v1910_v30  ;;  %v1900_v7 = vsub.f32 %v3884_v3, %v1886_v1 }
 0x89f   : > { %v1567_v57 = vpack.c.bf16 %v1562_v38, %v1561_v52  ;;  %2630 = vmatpush3.bf16.msra.mxu0 %v2839_v0 }
 0x8a0   : > { %v1912_v13 = vmul.f32 1.442695, %v1900_v7  ;;  %v2840_v7 = vld [vmem:[#allocation7 + $0x30] sm:$0xff]  }
 0x8a1   : > { %v1892_v2 = vpop.xlane.xlu0 %1891  ;;  %2623 = vmatprep.mubr.msk.bf16.mxu0 %vm702_vm3, %v1567_v57 }
 0x8a2   : > { %v1902_v35 = vsub.f32 %v3892_v5, %v1892_v2  ;;  %2624 = vmatmul.mubr.msk.bf16.gmra.mrb[36].mxu0 %vm702_vm3, %v1568_v54 }
 0x8a4   : > { %v3939_v58 = vpop.eup %2938  ;;  %v1916_v50 = vmul.f32 1.442695, %v1902_v35 }
 0x8a5   : > { %v1926_v12 = vsel %vm702_vm3, %v3939_v58, 0.0  ;;  %v3943_v56 = vpop.eup %2940 }
 0x8a6   : > { %2944 = vpow2.f32 %v1916_v50  ;;  %1927 = vadd.xlane.f32.xlu0 %v1926_v12  ;;  %v1920_v3 = vsel %vm702_vm3, %v3943_v56, 0.0 }
 0x8a7   : > { %2946 = vpow2.f32 %v1912_v13  ;;  %v2841_v13 = vld [vmem:[#allocation7 + $0x38] sm:$0xff]  }
 0x8a8   : > { %v3945_v17 = vpop.eup %2942 }
 0x8a9   : > { %v1929_v5 = vsel %vm702_vm3, %v3945_v17, 0.0 }
 0x8aa   : > { %1921 = vadd.xlane.f32.xlu0 %v1920_v3  ;;  %1930 = vadd.xlane.f32.xlu1 %v1929_v5 }
 0x8b0   : > { %v3951_v32 = vpop.eup %2944 }
 0x8b1   : > { %v1938_v46 = vsel %vm702_vm3, %v3951_v32, 0.0  ;;  %v3955_v55 = vpop.eup %2946 }
 0x8b2   : > { %1939 = vadd.xlane.f32.xlu0 %v1938_v46  ;;  %v1932_v41 = vsel %vm702_vm3, %v3955_v55, 0.0 }
 0x8b6   : > { %1933 = vadd.xlane.f32.xlu0 %v1932_v41 }
 0x8c6   : > { %v1877_v19 = vpop.xlane.xlu1 %1876 }
 0x8c7   : > { %v1897_v39 = vsub.f32 %v3902_v16, %v1877_v19 }
 0x8c9   : > { %v1906_v14 = vmul.f32 1.442695, %v1897_v39 }
 0x8ca   : > { %v1889_v23 = vpop.xlane.xlu1 %1888 }
 0x8cb   : > { %2948 = vpow2.f32 %v1906_v14  ;;  %v1901_v27 = vsub.f32 %v3910_v18, %v1889_v23 }
 0x8cc   : > { %1964 = vrot.lane.b32.xlu0 %v3498_v44, %s3140_s30 }
 0x8cd   : > { %v1914_v22 = vmul.f32 1.442695, %v1901_v27 }
 0x8ce   : > { %v1895_v25 = vpop.xlane.xlu1 %1894 }
 0x8cf   : > { %v1903_v16 = vsub.f32 %v3918_v6, %v1895_v25 }
 0x8d1   : > { %v1918_v4 = vmul.f32 1.442695, %v1903_v16 }
 0x8d3   : > { %2950 = vpow2.f32 %v1918_v4  ;;  %v2375_v4 = vld [vmem:[%s4056_s3] ss:$0 sm:$0xff] }
 0x8d4   : > { %2952 = vpow2.f32 %v1914_v22 }
 0x8d5   : > { %v2949_v10 = vpop.eup %2948 }
 0x8d6   : > { %v1923_v20 = vsel %vm702_vm3, %v2949_v10, 0.0 }
 0x8d7   : > { %1924 = vadd.xlane.f32.xlu1 %v1923_v20 }
 0x8dd   : > { %v3969_v44 = vpop.eup %2950 }
 0x8de   : > { %v1941_v60 = vsel %vm702_vm3, %v3969_v44, 0.0  ;;  %v3973_v36 = vpop.eup %2952 }
 0x8e8   : > { %1966 = vrot.lane.b32.xlu1 %v3496_v42, %s3140_s30  ;;  %v1935_v42 = vsel %vm702_vm3, %v3973_v36, 0.0 }
 0x8ec   : > { %1968 = vrot.lane.b32.xlu1 %v3522_v28, %s3140_s30 }
 0x910   : > { %1942 = vadd.xlane.f32.xlu1 %v1941_v60 }
 0x914   : > { %1936 = vadd.xlane.f32.xlu1 %v1935_v42 }
 0x925   : > { %1970 = vrot.lane.b32.xlu1 %v3528_v29, %s3140_s30 }
 0x933   : > { %v1928_v28 = vpop.xlane.xlu0 %1927 }
 0x937   : > { %v1922_v18 = vpop.xlane.xlu0 %1921  ;;  %v1931_v11 = vpop.xlane.xlu1 %1930 }
 0x93f   : > { %v1940_v6 = vpop.xlane.xlu0 %1939 }
 0x943   : > { %v1934_v37 = vpop.xlane.xlu0 %1933 }
 0x947   : > { %v1965_v15 = vpop.permute.xlu0 %1964 }
 0x948   : > { %2655 = vmatprep.subr.bf16.mxu0 %v1965_v15 }
 0x964   : > { %v1925_v8 = vpop.xlane.xlu1 %1924 }
 0x965   : > { %2954 = vrcp.f32 %v1925_v8 }
 0x966   : > { %2956 = vrcp.f32 %v1922_v18 }
 0x967   : > { %2958 = vrcp.f32 %v1931_v11 }
 0x968   : > { %v1967_v63 = vpop.permute.xlu1 %1966  ;;  %2960 = vrcp.f32 %v1928_v28 }
 0x96c   : > { %v1969_v62 = vpop.permute.xlu1 %1968 }
 0x96d   : > { %v2621_v24 = vpop.f32.mrb[32].mxu0 }
 0x96e   : > { %v1627_v40 = vpop.f32.mrb[33].mxu0 }
 0x96f   : > { %v2622_v49 = vpop.f32.mrb[34].mxu0  ;;  %v2955_v29 = vpop.eup %2954 }
 0x970   : > { %v1659_v43 = vpack.c.bf16 %v2622_v49, %v2621_v24  ;;  %v1630_v59 = vpop.f32.mrb[35].mxu0  ;;  %v2957_v26 = vpop.eup %2956  ;;  %v1953_v48 = vmul.f32 %v2955_v29, %v2949_v10 }
 0x971   : > { %v1658_v61 = vpack.c.bf16 %v1630_v59, %v1627_v40  ;;  %v1952_v30 = vmul.f32 %v2957_v26, %v3943_v56  ;;  %v2959_v52 = vpop.eup %2958 }
 0x972   : > { %v2961_v51 = vpop.eup %2960  ;;  %v1955_v57 = vmul.f32 %v2959_v52, %v3945_v17 }
 0x973   : > { %2631 = vmatprep.mubr.msk.bf16.mxu0 %vm604_vm0, %v1658_v61  ;;  %v1960_v45 = vpack.c.bf16 %v1953_v48, %v1952_v30  ;;  %v1954_v2 = vmul.f32 %v2961_v51, %v3939_v58 }
 0x974   : > { %2632 = vmatmul.mubr.msk.bf16.vlgmr.msra.gmra.mrb[24].mxu0 %vm604_vm0, %v1659_v43 }
 0x975   : > { %2656 = vmatpush3.bf16.msra.mxu0 %v1965_v15  ;;  %v2625_v9 = vpop.f32.mrb[36].mxu0  ;;  %v1961_v35 = vpack.c.bf16 %v1955_v57, %v1954_v2 }
 0x976   : > { %2657 = vmatprep.subr.bf16.mxu0 %v1967_v63  ;;  %v1643_v34 = vpop.f32.mrb[37].mxu0 }
 0x977   : > { %v2626_v33 = vpop.f32.mrb[38].mxu0 }
 0x978   : > { %v1661_v31 = vpack.c.bf16 %v2626_v33, %v2625_v9  ;;  %v1646_v21 = vpop.f32.mrb[39].mxu0 }
 0x979   : > { %v1660_v47 = vpack.c.bf16 %v1646_v21, %v1643_v34  ;;  %2658 = vmatpush3.bf16.msra.mxu0 %v1967_v63 }
 0x97a   : > { %2659 = vmatprep.subr.bf16.mxu0 %v1969_v62 }
 0x97b   : > { %2635 = vmatprep.mubr.msk.bf16.mxu0 %vm604_vm0, %v1660_v47 }
 0x97c   : > { %2636 = vmatmul.mubr.msk.bf16.gmra.mrb[28].mxu0 %vm604_vm0, %v1661_v31 }
 0x97d   : > { %2660 = vmatpush3.bf16.msra.mxu0 %v1969_v62  ;;  %2663 = vmatprep.mubr.msk.bf16.mxu0 %vm702_vm3, %v1960_v45 }
 0x99d   : > { %v1943_v1 = vpop.xlane.xlu1 %1942 }
 0x99e   : > { %2962 = vrcp.f32 %v1943_v1 }
 0x99f   : > { %2964 = vrcp.f32 %v1934_v37 }
 0x9a0   : > { %2966 = vrcp.f32 %v1940_v6 }
 0x9a1   : > { %v1937_v38 = vpop.xlane.xlu1 %1936 }
 0x9a2   : > { %2968 = vrcp.f32 %v1937_v38 }
 0x9a5   : > { %v1971_v54 = vpop.permute.xlu1 %1970 }
 0x9a6   : > { %2661 = vmatprep.subr.bf16.mxu0 %v1971_v54 }
 0x9a7   : > { %2662 = vmatpush3.bf16.msra.mxu0 %v1971_v54 }
 0x9a8   : > { %2671 = vmatprep.subr.bf16.mxu0 %v2840_v7  ;;  %v2963_v50 = vpop.eup %2962 }
 0x9a9   : > { %v2965_v12 = vpop.eup %2964  ;;  %v1959_v5 = vmul.f32 %v2963_v50, %v3969_v44 }
 0x9aa   : > { %2664 = vmatmul.mubr.msk.bf16.vlgmr.msra.gmra.mrb[40].mxu0 %vm702_vm3, %v1961_v35  ;;  %v2967_v56 = vpop.eup %2966  ;;  %v1956_v17 = vmul.f32 %v2965_v12, %v3955_v55 }
 0x9ab   : > { %2672 = vmatpush3.bf16.msra.mxu0 %v2840_v7  ;;  %v1958_v58 = vmul.f32 %v2967_v56, %v3951_v32 }
 0x9ac   : > { %v2969_v3 = vpop.eup %2968  ;;  %2673 = vmatprep.subr.bf16.mxu0 %v2841_v13 }
 0x9ad   : > { %v1957_v46 = vmul.f32 %v2969_v3, %v3973_v36  ;;  %v1963_v53 = vpack.c.bf16 %v1959_v5, %v1958_v58 }
 0x9af   : > { %v1962_v41 = vpack.c.bf16 %v1957_v46, %v1956_v17  ;;  %2674 = vmatpush3.bf16.msra.mxu0 %v2841_v13 }
 0x9b1   : > { %2667 = vmatprep.mubr.msk.bf16.mxu0 %vm702_vm3, %v1962_v41 }
 0x9b2   : > { %2668 = vmatmul.mubr.msk.bf16.gmra.mrb[44].mxu0 %vm702_vm3, %v1963_v53 }
 0xa7d   : > { %v2665_v0 = vpop.f32.mrb[40].mxu0 }
 0xa7e   : > { %v2022_v19 = vpop.f32.mrb[41].mxu0 }
 0xa7f   : > { %v2666_v39 = vpop.f32.mrb[42].mxu0 }
 0xa80   : > { %v2054_v14 = vpack.c.bf16 %v2666_v39, %v2665_v0  ;;  %v2025_v10 = vpop.f32.mrb[43].mxu0 }
 0xa81   : > { %v2053_v20 = vpack.c.bf16 %v2025_v10, %v2022_v19 }
 0xa83   : > { %2675 = vmatprep.mubr.msk.bf16.mxu0 %vm604_vm0, %v2053_v20 }
 0xa84   : > { %2676 = vmatmul.mubr.msk.bf16.vlgmr.msra.gmra.mrb[24].mxu0 %vm604_vm0, %v2054_v14 }
 0xa85   : > { %v2669_v55 = vpop.f32.mrb[44].mxu0 }
 0xa86   : > { %v2038_v32 = vpop.f32.mrb[45].mxu0 }
 0xa87   : > { %v2670_v23 = vpop.f32.mrb[46].mxu0 }
 0xa88   : > { %v2056_v25 = vpack.c.bf16 %v2670_v23, %v2669_v55  ;;  %v2041_v16 = vpop.f32.mrb[47].mxu0 }
 0xa89   : > { %v2055_v27 = vpack.c.bf16 %v2041_v16, %v2038_v32 }
 0xa8b   : > { %2679 = vmatprep.mubr.msk.bf16.mxu0 %vm604_vm0, %v2055_v27 }
 0xa8c   : > { %2680 = vmatmul.mubr.msk.bf16.gmra.mrb[28].mxu0 %vm604_vm0, %v2056_v25 }
 0xb57   : > { %v2677_v22 = vpop.f32.mrb[24].mxu0 }
 0xb58   : > { %v2162_v44 = vadd.f32 %v2677_v22, %v2375_v4  ;;  %v2115_v60 = vpop.f32.mrb[25].mxu0 }
 0xb59   : > { %v2160_v36 = vadd.f32 %v2375_v4, %v2115_v60  ;;  %v2678_v42 = vpop.f32.mrb[26].mxu0 }
 0xb5a   : > { %2170 = vst [vmem:[%s244_s7 + $0x10] sm:$0xff] %v2162_v44  ;;  %v2163_v28 = vadd.f32 %v2678_v42, %v2375_v4  ;;  %v2118_v18 = vpop.f32.mrb[27].mxu0 }
 0xb5b   : > { %2168 = vst [vmem:[%s244_s7] sm:$0xff] %v2160_v36  ;;  %v2161_v6 = vadd.f32 %v2375_v4, %v2118_v18 }
 0xb5c   : > { %2171 = vst [vmem:[%s244_s7 + $0x18] sm:$0xff] %v2163_v28 }
 0xb5d   : > { %2169 = vst [vmem:[%s244_s7 + $0x8] sm:$0xff] %v2161_v6 }
 0xb5f   : > { %v2681_v37 = vpop.f32.mrb[28].mxu0 }
 0xb60   : > { %v2166_v15 = vadd.f32 %v2681_v37, %v2375_v4  ;;  %v2131_v11 = vpop.f32.mrb[29].mxu0 }
 0xb61   : > { %v2164_v8 = vadd.f32 %v2375_v4, %v2131_v11  ;;  %v2682_v24 = vpop.f32.mrb[30].mxu0 }
 0xb62   : > { %2174 = vst [vmem:[%s244_s7 + $0x30] sm:$0xff] %v2166_v15  ;;  %v2167_v40 = vadd.f32 %v2682_v24, %v2375_v4  ;;  %v2134_v49 = vpop.f32.mrb[31].mxu0 }
 0xb63   : > { %2172 = vst [vmem:[%s244_s7 + $0x20] sm:$0xff] %v2164_v8  ;;  %v2165_v43 = vadd.f32 %v2375_v4, %v2134_v49 }
 0xb64   : > { %2175 = vst [vmem:[%s244_s7 + $0x38] sm:$0xff] %v2167_v40 }
 0xb65   : > { %2173 = vst [vmem:[%s244_s7 + $0x28] sm:$0xff] %v2165_v43 }
 0xb66   : > { %3069 = shalt.err (!%p3066_p2)
}
 0xb67   : > { %s3070_s13 = scalar_lea.hbm %s4009_s29, 1024  ;;  %s3074_s30 = scalar_lea.hbm %s4057_s4, 2048 }
 0xb68   : > { %p3071_p13 = scmp.ne.s32.totalorder %s4009_s29, %s3070_s13  ;;  %p3075_p4 = scmp.lt.u32.totalorder %s4009_s29, %s4057_s4 }
 0xb69   : > { %p3076_p7 = scmp.lt.u32.totalorder %s3074_s30, %s3070_s13  ;;  %p3078_p11 = scmp.lt.u32.totalorder %s3070_s13, %s4009_s29 }
 0xb6a   : > { %p3072_p6 = pnand %p3071_p13, %p4071_p0 }
 0xb6b   : > { %p3077_p8 = por %p3076_p7, %p3075_p4 }
 0xb6c   : > { %p3073_p10 = pneg %p3072_p6 }
 0xb6d   : > { %p3079_p1 = por %p3078_p11, %p3077_p8 }
 0xb6f   : > { %p3080_p3 = pnand %p3079_p1, %p3073_p10 }
 0xb71   : > { %3083 = shalt.err (!%p3080_p3)
}
 0xb72   : > { %s3142_s7 = smov 128   ;;  %s3143_s26 = smov 8  }
 0xb73   : > { %2733 = dma.vmem_to_hbm [thread:$0]  (%p4071_p0), %s4004_s24, 1024, %s4009_s29, %s2177_s19, %s3142_s7, %s3142_s7, %s3143_s26  }
 0xb74 PF: > { %s2205_s28 = sand.u32 1, %s3114_s15   ;;  %p4072_p5 = scmp.ne.s32.totalorder %s4062_s22, 0 }
 0xb75   : > { %p4073_p9 = scmp.ge.s32.totalorder %s3126_s18, 2  ;;  %s2206_s27 = scalar_lea.sflag [#allocation4], %s2205_s28 }
 0xb77   : > { %p2747_p12 = pnand %p4073_p9, %p4072_p5 }
 0xb79   : > { %3109 = dma.done.wait (!%p2747_p12), %s2206_s27, 1024  }
 0xb7a   : > { %3111 = vsyncadd (!%p2747_p12), %s2206_s27, 4294966272  ;;  %p18_p2 = scmp.ge.s32.totalorder %s3279_s11, 4   ;;  %s4074_s15 = smov %s3118_s16 }
 0xb7b   : > { %s4075_s16 = smov %s3122_s17  ;;  %s4076_s17 = smov %s3288_s14 }
 0xb7c   : > { %s4077_s18 = smov %s3279_s11  ;;  %20 = sbr.rel (!%p18_p2) target bundleno = 6 (0x6), region = 89 }
 0xb83   :  { %2211 = vsyncpa [#allocation3], 1 }
 0xb84   :  { %2213 = vsyncpa [#allocation3 + $0x1], 1 }
 0xb85   :  { %2214 = vsyncpa [#allocation6], 1 }
 0xb86   :  { %2215 = vsyncpa [#allocation4], 1 }
 0xb87   :  { %2217 = vsyncpa [#allocation4 + $0x1], 1 }

</bundles_post_ra>
